<compile_context>
chip_gen: v7x
topology: tpu7x:2x2x1
jax: 0.10.0
libtpu: 0.0.40
codegen_flags: <defaults>
</compile_context>

<pallas_src>
import math
import jax
import jax.numpy as jnp
from jax.experimental import pallas as pl
from jax.experimental.pallas import tpu as pltpu


# ----------------------------- in-kernel helpers -----------------------------

def _layernorm(x, gamma, beta, eps=1e-5):
    mu = jnp.mean(x, axis=-1, keepdims=True)
    var = jnp.mean(jnp.square(x - mu), axis=-1, keepdims=True)
    return (x - mu) * jax.lax.rsqrt(var + eps) * gamma + beta


def _gelu_exact(x):
    # torch.nn.GELU default == exact erf formulation
    return 0.5 * x * (1.0 + jax.lax.erf(x * (1.0 / math.sqrt(2.0))))


# ------------------------------- fused kernel --------------------------------

def make_decoder_kernel(n_head, head_dim):
    inner = n_head * head_dim

    def _attn_core(q2, k2, v2, wo, bo, Bs, Nq, Nk):
        # q2: (Bs*Nq, inner) f32; k2/v2: (Bs*Nk, inner) f32 (already projected).
        # Scale is pre-folded into Wq, so scores need no extra multiply.
        q3 = q2.reshape(Bs, Nq, inner)
        k3 = k2.reshape(Bs, Nk, inner)
        v3 = v2.reshape(Bs, Nk, inner)
        head_outs = []
        for h in range(n_head):                      # static, small loop; per-head work
            sl = slice(h * head_dim, (h + 1) * head_dim)
            qh = q3[:, :, sl].astype(jnp.bfloat16)
            kh = k3[:, :, sl].astype(jnp.bfloat16)
            vh = v3[:, :, sl].astype(jnp.bfloat16)
            dots = jnp.einsum("bqd,bkd->bqk", qh, kh,
                              preferred_element_type=jnp.float32)
            dots = dots - jnp.max(dots, axis=-1, keepdims=True)
            e = jnp.exp(dots)
            p = e * pl.reciprocal(jnp.sum(e, axis=-1, keepdims=True), approx=True)
            oh = jnp.einsum("bqk,bkd->bqd", p.astype(jnp.bfloat16), vh,
                            preferred_element_type=jnp.float32)
            head_outs.append(oh)
        o = jnp.concatenate(head_outs, axis=-1) if n_head > 1 else head_outs[0]
        # One lane-dense (rows, inner) @ (inner, D) output projection (== concat+matmul).
        return jnp.dot(o.reshape(Bs * Nq, inner).astype(jnp.bfloat16), wo,
                       preferred_element_type=jnp.float32) + bo

    def kernel(x_ref, to_ref,
               vec_ref, b1_ref,                       # consolidated small params
               sa_qkv_ref, sa_wo_ref,                 # self-attention weights (bf16)
               ca_wq_ref, ca_wkv_ref, ca_wo_ref,      # cross-attention weights (bf16)
               ff_w1_ref, ff_w2_ref,                  # feed-forward weights (bf16)
               o_ref, state_ref):
        layer = pl.program_id(1)
        last = pl.num_programs(1) - 1
        Bs, N, D = state_ref.shape
        M = to_ref.shape[1]

        # Load this shard's batch slab into the resident VMEM state at the first layer.
        @pl.when(layer == 0)
        def _():
            state_ref[...] = x_ref[...].astype(jnp.float32)

        x = state_ref[...]                       # (Bs, N, D) f32, resident across layers
        to = to_ref[...].astype(jnp.float32)     # (Bs, M, D) f32 (DMA'd once per shard)

        vecs = vec_ref[0]                        # (9, D) f32
        sa_g, sa_b, sa_bo = vecs[0:1], vecs[1:2], vecs[2:3]
        ca_g, ca_b, ca_bo = vecs[3:4], vecs[4:5], vecs[5:6]
        ff_g, ff_b, ff_b2 = vecs[6:7], vecs[7:8], vecs[8:9]
        b1 = b1_ref[0]                           # (1, ff_dim) f32

        # --- self-attention: PreNorm with to=None -> kv from LN(x); fused QKV matmul ---
        xn = _layernorm(x, sa_g, sa_b)
        xn2 = xn.reshape(Bs * N, D).astype(jnp.bfloat16)
        qkv = jnp.dot(xn2, sa_qkv_ref[0], preferred_element_type=jnp.float32)
        q2 = qkv[:, :inner]
        k2 = qkv[:, inner:2 * inner]
        v2 = qkv[:, 2 * inner:]
        o = _attn_core(q2, k2, v2, sa_wo_ref[0], sa_bo, Bs, N, N)
        x = x + o.reshape(Bs, N, D)

        # --- cross-attention: kv from raw (unnormalized) `to` ---
        xn = _layernorm(x, ca_g, ca_b)
        q2 = jnp.dot(xn.reshape(Bs * N, D).astype(jnp.bfloat16), ca_wq_ref[0],
                     preferred_element_type=jnp.float32)
        kv = jnp.dot(to.reshape(Bs * M, D).astype(jnp.bfloat16), ca_wkv_ref[0],
                     preferred_element_type=jnp.float32)
        k2, v2 = kv[:, :inner], kv[:, inner:]
        o = _attn_core(q2, k2, v2, ca_wo_ref[0], ca_bo, Bs, N, M)
        x = x + o.reshape(Bs, N, D)

        # --- feed-forward (exact GELU) ---
        xn = _layernorm(x, ff_g, ff_b)
        h = jnp.dot(xn.reshape(Bs * N, D).astype(jnp.bfloat16), ff_w1_ref[0],
                    preferred_element_type=jnp.float32) + b1
        h = _gelu_exact(h)
        y = jnp.dot(h.astype(jnp.bfloat16), ff_w2_ref[0],
                    preferred_element_type=jnp.float32) + ff_b2
        x = x + y.reshape(Bs, N, D)

        # Carry state for the next layer; write HBM output only once, at the last layer.
        @pl.when(layer != last)
        def _():
            state_ref[...] = x

        @pl.when(layer == last)
        def _():
            o_ref[...] = x.astype(o_ref.dtype)

    return kernel


# --------------------------------- wrappers ----------------------------------

def pack_params(layers, n_head, head_dim):
    """Stack per-layer params along depth.

    Matmul weights are kept 2-D (no per-head pre-split), cast to bf16, and the
    softmax scale head_dim**-0.5 is folded into Wq.  Self-attention QKV is fused
    into one (D, 3*inner) matrix.  The 9 tiny (D,)-vectors per layer are packed
    into a single (depth, 9, D) array."""
    scale = float(head_dim) ** -0.5
    bf = jnp.bfloat16

    vecs, b1s = [], []
    sa_qkv, sa_wo, ca_wq, ca_wkv, ca_wo, ff_w1, ff_w2 = [], [], [], [], [], [], []
    for lp in layers:
        sa, ca, ff = lp["self_attn"], lp["cross_attn"], lp["ff"]
        vecs.append(jnp.stack([
            sa["ln_g"][0], sa["ln_b"][0], sa["bo"][0],
            ca["ln_g"][0], ca["ln_b"][0], ca["bo"][0],
            ff["ln_g"][0], ff["ln_b"][0], ff["b2"][0],
        ], axis=0))
        b1s.append(ff["b1"])
        sa_qkv.append(jnp.concatenate([sa["wq"] * scale, sa["wkv"]], axis=-1))
        sa_wo.append(sa["wo"])
        ca_wq.append(ca["wq"] * scale)
        ca_wkv.append(ca["wkv"])
        ca_wo.append(ca["wo"])
        ff_w1.append(ff["w1"])
        ff_w2.append(ff["w2"])

    return dict(
        vecs=jnp.stack(vecs).astype(jnp.float32),     # (depth, 9, D)    f32
        b1=jnp.stack(b1s).astype(jnp.float32),        # (depth, 1, ff)   f32
        sa_qkv=jnp.stack(sa_qkv).astype(bf),          # (depth, D, 3*inner)
        sa_wo=jnp.stack(sa_wo).astype(bf),            # (depth, inner, D)
        ca_wq=jnp.stack(ca_wq).astype(bf),            # (depth, D, inner)
        ca_wkv=jnp.stack(ca_wkv).astype(bf),          # (depth, D, 2*inner)
        ca_wo=jnp.stack(ca_wo).astype(bf),            # (depth, inner, D)
        ff_w1=jnp.stack(ff_w1).astype(bf),            # (depth, D, ff)
        ff_w2=jnp.stack(ff_w2).astype(bf),            # (depth, ff, D)
    )


def tinr_decoder_forward(x, to, layers, n_head, head_dim):
    B, N, D = x.shape
    M = to.shape[1]
    depth = len(layers)
    p = pack_params(layers, n_head, head_dim)

    # Shard the batch across a leading "parallel" grid axis (2 shards -> both v7x TCs);
    # each shard processes B/num_shards batch elements per step so each layer's weights
    # are DMA'd only num_shards times (not B times).
    num_shards = 2 if (B % 2 == 0) else 1
    Bs = B // num_shards
    # TODO(synk): for very large B*N*D that does not fit VMEM, tile the shard's batch
    # further and carry x via input_output_aliases instead of a resident scratch.

    weights = [p["vecs"], p["b1"], p["sa_qkv"], p["sa_wo"],
               p["ca_wq"], p["ca_wkv"], p["ca_wo"], p["ff_w1"], p["ff_w2"]]

    def wspec(arr):
        tail = arr.shape[1:]
        return pl.BlockSpec((1,) + tail,
                            lambda s, l, _n=len(tail): (l,) + (0,) * _n)

    kernel = make_decoder_kernel(n_head, head_dim)
    return pl.pallas_call(
        kernel,
        out_shape=jax.ShapeDtypeStruct((B, N, D), x.dtype),
        grid=(num_shards, depth),
        in_specs=[pl.BlockSpec((Bs, N, D), lambda s, l: (s, 0, 0)),
                  pl.BlockSpec((Bs, M, D), lambda s, l: (s, 0, 0))]
                 + [wspec(w) for w in weights],
        out_specs=pl.BlockSpec((Bs, N, D), lambda s, l: (s, 0, 0)),
        scratch_shapes=[pltpu.VMEM((Bs, N, D), jnp.float32)],
        compiler_params=pltpu.CompilerParams(
            dimension_semantics=("parallel", "arbitrary"),
            vmem_limit_bytes=48 * 1024 * 1024),
    )(x, to, *weights)


# ---------------------------- parameter construction -------------------------

def init_params(key, dim, depth, n_head, head_dim, ff_dim):
    inner = n_head * head_dim
    layers = []
    for _ in range(depth):
        def attn_params(k):
            k1, k2, k3 = jax.random.split(k, 3)
            return {
                "ln_g": jnp.ones((1, dim), jnp.float32),
                "ln_b": jnp.zeros((1, dim), jnp.float32),
                "wq": 0.05 * jax.random.normal(k1, (dim, inner), jnp.float32),
                "wkv": 0.05 * jax.random.normal(k2, (dim, 2 * inner), jnp.float32),
                "wo": 0.05 * jax.random.normal(k3, (inner, dim), jnp.float32),
                "bo": jnp.zeros((1, dim), jnp.float32),
            }

        key, ks, kc, k1, k2 = jax.random.split(key, 5)
        layers.append({
            "self_attn": attn_params(ks),
            "cross_attn": attn_params(kc),
            "ff": {
                "ln_g": jnp.ones((1, dim), jnp.float32),
                "ln_b": jnp.zeros((1, dim), jnp.float32),
                "w1": 0.05 * jax.random.normal(k1, (dim, ff_dim), jnp.float32),
                "b1": jnp.zeros((1, ff_dim), jnp.float32),
                "w2": 0.05 * jax.random.normal(k2, (ff_dim, dim), jnp.float32),
                "b2": jnp.zeros((1, dim), jnp.float32),
            },
        })
    return layers


# ------------------------------ pure-JAX reference ---------------------------

def _ln_ref(x, g, b, eps=1e-5):
    mu = x.mean(-1, keepdims=True)
    var = ((x - mu) ** 2).mean(-1, keepdims=True)
    return (x - mu) / jnp.sqrt(var + eps) * g + b


def _attn_ref(xn, kv_src, p, n_head, head_dim):
    inner = n_head * head_dim
    q = xn @ p["wq"]
    kv = kv_src @ p["wkv"]
    k, v = kv[..., :inner], kv[..., inner:]
    B, N, _ = q.shape
    M = k.shape[1]
    qh = q.reshape(B, N, n_head, head_dim).transpose(0, 2, 1, 3)
    kh = k.reshape(B, M, n_head, head_dim).transpose(0, 2, 1, 3)
    vh = v.reshape(B, M, n_head, head_dim).transpose(0, 2, 1, 3)
    dots = jnp.einsum("bhnd,bhmd->bhnm", qh, kh) * head_dim ** -0.5
    attn = jax.nn.softmax(dots, -1)
    o = jnp.einsum("bhnm,bhmd->bhnd", attn, vh).transpose(0, 2, 1, 3).reshape(B, N, inner)
    return o @ p["wo"] + p["bo"][0]


def reference_forward(x, to, layers, n_head, head_dim):
    for lp in layers:
        pa = lp["self_attn"]
        xn = _ln_ref(x, pa["ln_g"][0], pa["ln_b"][0])
        x = x + _attn_ref(xn, xn, pa, n_head, head_dim)
        pc = lp["cross_attn"]
        xn = _ln_ref(x, pc["ln_g"][0], pc["ln_b"][0])
        x = x + _attn_ref(xn, to, pc, n_head, head_dim)
        pf = lp["ff"]
        xn = _ln_ref(x, pf["ln_g"][0], pf["ln_b"][0])
        h = jax.nn.gelu(xn @ pf["w1"] + pf["b1"][0], approximate=False)
        x = x + (h @ pf["w2"] + pf["b2"][0])
    return x


# ------------------------------------ main ------------------------------------

if __name__ == "__main__":
    # small config: dim=32, depth=2, n_head=2, head_dim=16, ff_dim=64
    dim, depth, n_head, head_dim, ff_dim = 32, 2, 2, 16, 64
    B, N, M = 2, 8, 16

    key = jax.random.PRNGKey(0)
    kx, kt, kp = jax.random.split(key, 3)
    x = jax.random.normal(kx, (B, N, dim), jnp.float32)
    to = jax.random.normal(kt, (B, M, dim), jnp.float32)
    layers = init_params(kp, dim, depth, n_head, head_dim, ff_dim)

    out = tinr_decoder_forward(x, to, layers, n_head, head_dim)
    out = jax.block_until_ready(out)

    ref = reference_forward(x, to, layers, n_head, head_dim)
    err = float(jnp.max(jnp.abs(out - ref)))
    # Tolerance absorbs bf16 matmul operands (f32 accumulation) and the approx EUP
    # reciprocal in the softmax denominator; observed error is O(1e-3..1e-2).
    assert err < 5e-2, f"mismatch vs reference: {err}"

    print("KERNEL_OK")
</pallas_src>

<mosaic_0001>
module attributes {stable_mosaic.version = 11 : i64} {
  func.func @kernel(%arg0: i32, %arg1: i32, %arg2: memref<1x8x32xf32, #tpu.memory_space<vmem>>, %arg3: memref<1x16x32xf32, #tpu.memory_space<vmem>>, %arg4: memref<1x9x32xf32, #tpu.memory_space<vmem>>, %arg5: memref<1x1x64xf32, #tpu.memory_space<vmem>>, %arg6: memref<1x32x96xbf16, #tpu.memory_space<vmem>>, %arg7: memref<1x32x32xbf16, #tpu.memory_space<vmem>>, %arg8: memref<1x32x32xbf16, #tpu.memory_space<vmem>>, %arg9: memref<1x32x64xbf16, #tpu.memory_space<vmem>>, %arg10: memref<1x32x32xbf16, #tpu.memory_space<vmem>>, %arg11: memref<1x32x64xbf16, #tpu.memory_space<vmem>>, %arg12: memref<1x64x32xbf16, #tpu.memory_space<vmem>>, %arg13: memref<1x8x32xf32, #tpu.memory_space<vmem>>, %arg14: memref<1x8x32xf32, #tpu.memory_space<vmem>>) attributes {dimension_semantics = [#tpu.dimension_semantics<parallel>, #tpu.dimension_semantics<arbitrary>], iteration_bounds = array<i64: 2, 2>, scalar_prefetch = 0 : i64, scratch_operands = 1 : i64, tpu.core_type = #tpu.core_type<tc>, window_params = [{transform_indices = @transform_0, window_bounds = array<i64: 1, 8, 32>}, {transform_indices = @transform_1, window_bounds = array<i64: 1, 16, 32>}, {transform_indices = @transform_2, window_bounds = array<i64: 1, 9, 32>}, {transform_indices = @transform_3, window_bounds = array<i64: 1, 1, 64>}, {transform_indices = @transform_4, window_bounds = array<i64: 1, 32, 96>}, {transform_indices = @transform_5, window_bounds = array<i64: 1, 32, 32>}, {transform_indices = @transform_6, window_bounds = array<i64: 1, 32, 32>}, {transform_indices = @transform_7, window_bounds = array<i64: 1, 32, 64>}, {transform_indices = @transform_8, window_bounds = array<i64: 1, 32, 32>}, {transform_indices = @transform_9, window_bounds = array<i64: 1, 32, 64>}, {transform_indices = @transform_10, window_bounds = array<i64: 1, 64, 32>}, {transform_indices = @transform_11, window_bounds = array<i64: 1, 8, 32>}]} {
    %c0_i32 = arith.constant 0 : i32
    %0 = arith.cmpi eq, %arg1, %c0_i32 : i32
    %1 = arith.extui %0 : i1 to i32
    %c0_i32_0 = arith.constant 0 : i32
    %2 = arith.cmpi ne, %1, %c0_i32_0 : i32
    scf.if %2 {
      %c0_76 = arith.constant 0 : index
      %c0_77 = arith.constant 0 : index
      %c0_78 = arith.constant 0 : index
      %241 = vector.load %arg2[%c0_76, %c0_77, %c0_78] : memref<1x8x32xf32, #tpu.memory_space<vmem>>, vector<1x8x32xf32>
      %c0_79 = arith.constant 0 : index
      %c0_80 = arith.constant 0 : index
      %c0_81 = arith.constant 0 : index
      %242 = vector.load %arg14[%c0_79, %c0_80, %c0_81] : memref<1x8x32xf32, #tpu.memory_space<vmem>>, vector<1x8x32xf32>
      tpu.vector_store %arg14[%c0_79, %c0_80, %c0_81], %241 {strides = array<i32>} : memref<1x8x32xf32, #tpu.memory_space<vmem>>, vector<1x8x32xf32>,
    } else {
    }
    %c0 = arith.constant 0 : index
    %c0_1 = arith.constant 0 : index
    %c0_2 = arith.constant 0 : index
    %3 = vector.load %arg14[%c0, %c0_1, %c0_2] : memref<1x8x32xf32, #tpu.memory_space<vmem>>, vector<1x8x32xf32>
    %c0_3 = arith.constant 0 : index
    %c0_4 = arith.constant 0 : index
    %c0_5 = arith.constant 0 : index
    %4 = vector.load %arg3[%c0_3, %c0_4, %c0_5] : memref<1x16x32xf32, #tpu.memory_space<vmem>>, vector<1x16x32xf32>
    %c0_6 = arith.constant 0 : index
    %c0_7 = arith.constant 0 : index
    %c0_8 = arith.constant 0 : index
    %5 = vector.load %arg4[%c0_6, %c0_7, %c0_8] : memref<1x9x32xf32, #tpu.memory_space<vmem>>, vector<1x9x32xf32>
    %6 = vector.shape_cast %5 : vector<1x9x32xf32> to vector<9x32xf32>
    %7 = vector.extract_strided_slice %6 {offsets = [0, 0], sizes = [1, 32], strides = [1, 1]} : vector<9x32xf32> to vector<1x32xf32>
    %8 = vector.extract_strided_slice %6 {offsets = [1, 0], sizes = [1, 32], strides = [1, 1]} : vector<9x32xf32> to vector<1x32xf32>
    %9 = vector.extract_strided_slice %6 {offsets = [2, 0], sizes = [1, 32], strides = [1, 1]} : vector<9x32xf32> to vector<1x32xf32>
    %10 = vector.extract_strided_slice %6 {offsets = [3, 0], sizes = [1, 32], strides = [1, 1]} : vector<9x32xf32> to vector<1x32xf32>
    %11 = vector.extract_strided_slice %6 {offsets = [4, 0], sizes = [1, 32], strides = [1, 1]} : vector<9x32xf32> to vector<1x32xf32>
    %12 = vector.extract_strided_slice %6 {offsets = [5, 0], sizes = [1, 32], strides = [1, 1]} : vector<9x32xf32> to vector<1x32xf32>
    %13 = vector.extract_strided_slice %6 {offsets = [6, 0], sizes = [1, 32], strides = [1, 1]} : vector<9x32xf32> to vector<1x32xf32>
    %14 = vector.extract_strided_slice %6 {offsets = [7, 0], sizes = [1, 32], strides = [1, 1]} : vector<9x32xf32> to vector<1x32xf32>
    %15 = vector.extract_strided_slice %6 {offsets = [8, 0], sizes = [1, 32], strides = [1, 1]} : vector<9x32xf32> to vector<1x32xf32>
    %c0_9 = arith.constant 0 : index
    %c0_10 = arith.constant 0 : index
    %c0_11 = arith.constant 0 : index
    %16 = vector.load %arg5[%c0_9, %c0_10, %c0_11] : memref<1x1x64xf32, #tpu.memory_space<vmem>>, vector<1x1x64xf32>
    %17 = vector.shape_cast %16 : vector<1x1x64xf32> to vector<1x64xf32>
    %cst = arith.constant dense<0.000000e+00> : vector<1x8xf32>
    %18 = vector.multi_reduction <add>, %3, %cst [2] : vector<1x8x32xf32> to vector<1x8xf32>
    %19 = vector.shape_cast %18 : vector<1x8xf32> to vector<1x8x1xf32>
    %cst_12 = arith.constant 3.200000e+01 : f32
    %20 = vector.broadcast %cst_12 : f32 to vector<1x8x1xf32>
    %21 = arith.divf %19, %20 : vector<1x8x1xf32>
    %22 = vector.broadcast %21 : vector<1x8x1xf32> to vector<1x8x32xf32>
    %23 = arith.subf %3, %22 : vector<1x8x32xf32>
    %24 = arith.mulf %23, %23 : vector<1x8x32xf32>
    %cst_13 = arith.constant dense<0.000000e+00> : vector<1x8xf32>
    %25 = vector.multi_reduction <add>, %24, %cst_13 [2] : vector<1x8x32xf32> to vector<1x8xf32>
    %26 = vector.shape_cast %25 : vector<1x8xf32> to vector<1x8x1xf32>
    %cst_14 = arith.constant 3.200000e+01 : f32
    %27 = vector.broadcast %cst_14 : f32 to vector<1x8x1xf32>
    %28 = arith.divf %26, %27 : vector<1x8x1xf32>
    %29 = vector.broadcast %21 : vector<1x8x1xf32> to vector<1x8x32xf32>
    %30 = arith.subf %3, %29 : vector<1x8x32xf32>
    %cst_15 = arith.constant 9.99999974E-6 : f32
    %31 = vector.broadcast %cst_15 : f32 to vector<1x8x1xf32>
    %32 = arith.addf %28, %31 : vector<1x8x1xf32>
    %33 = math.rsqrt %32 : vector<1x8x1xf32>
    %34 = vector.broadcast %33 : vector<1x8x1xf32> to vector<1x8x32xf32>
    %35 = arith.mulf %30, %34 : vector<1x8x32xf32>
    %36 = vector.shape_cast %7 : vector<1x32xf32> to vector<1x1x32xf32>
    %37 = vector.broadcast %36 : vector<1x1x32xf32> to vector<1x8x32xf32>
    %38 = arith.mulf %35, %37 : vector<1x8x32xf32>
    %39 = vector.shape_cast %8 : vector<1x32xf32> to vector<1x1x32xf32>
    %40 = vector.broadcast %39 : vector<1x1x32xf32> to vector<1x8x32xf32>
    %41 = arith.addf %38, %40 : vector<1x8x32xf32>
    %42 = vector.shape_cast %41 : vector<1x8x32xf32> to vector<8x32xf32>
    %43 = arith.truncf %42 : vector<8x32xf32> to vector<8x32xbf16>
    %c0_16 = arith.constant 0 : index
    %c0_17 = arith.constant 0 : index
    %c0_18 = arith.constant 0 : index
    %44 = vector.load %arg6[%c0_16, %c0_17, %c0_18] : memref<1x32x96xbf16, #tpu.memory_space<vmem>>, vector<1x32x96xbf16>
    %45 = vector.shape_cast %44 : vector<1x32x96xbf16> to vector<32x96xbf16>
    %cst_19 = arith.constant dense<0.000000e+00> : vector<8x96xf32>
    %46 = tpu.matmul %43, %45, %cst_19 {dimension_numbers = #tpu.dot_dimension_numbers<[1], [0], [0], [1], [0, 0, 1, 1], [], []>} : vector<8x32xbf16>, vector<32x96xbf16>, vector<8x96xf32> -> vector<8x96xf32>
    %47 = vector.extract_strided_slice %46 {offsets = [0, 0], sizes = [8, 32], strides = [1, 1]} : vector<8x96xf32> to vector<8x32xf32>
    %48 = vector.extract_strided_slice %46 {offsets = [0, 32], sizes = [8, 32], strides = [1, 1]} : vector<8x96xf32> to vector<8x32xf32>
    %49 = vector.extract_strided_slice %46 {offsets = [0, 64], sizes = [8, 32], strides = [1, 1]} : vector<8x96xf32> to vector<8x32xf32>
    %c0_20 = arith.constant 0 : index
    %c0_21 = arith.constant 0 : index
    %c0_22 = arith.constant 0 : index
    %50 = vector.load %arg7[%c0_20, %c0_21, %c0_22] : memref<1x32x32xbf16, #tpu.memory_space<vmem>>, vector<1x32x32xbf16>
    %51 = vector.shape_cast %50 : vector<1x32x32xbf16> to vector<32x32xbf16>
    %52 = vector.shape_cast %47 : vector<8x32xf32> to vector<1x8x32xf32>
    %53 = vector.shape_cast %48 : vector<8x32xf32> to vector<1x8x32xf32>
    %54 = vector.shape_cast %49 : vector<8x32xf32> to vector<1x8x32xf32>
    %55 = vector.extract_strided_slice %52 {offsets = [0, 0, 0], sizes = [1, 8, 16], strides = [1, 1, 1]} : vector<1x8x32xf32> to vector<1x8x16xf32>
    %56 = arith.truncf %55 : vector<1x8x16xf32> to vector<1x8x16xbf16>
    %57 = vector.extract_strided_slice %53 {offsets = [0, 0, 0], sizes = [1, 8, 16], strides = [1, 1, 1]} : vector<1x8x32xf32> to vector<1x8x16xf32>
    %58 = arith.truncf %57 : vector<1x8x16xf32> to vector<1x8x16xbf16>
    %59 = vector.extract_strided_slice %54 {offsets = [0, 0, 0], sizes = [1, 8, 16], strides = [1, 1, 1]} : vector<1x8x32xf32> to vector<1x8x16xf32>
    %60 = arith.truncf %59 : vector<1x8x16xf32> to vector<1x8x16xbf16>
    "tpu.trace_start"() <{level = 10 : i32, message = "bqd,bkd->bqk"}> : () -> ()
    %cst_23 = arith.constant dense<0.000000e+00> : vector<1x8x8xf32>
    %61 = tpu.matmul %56, %58, %cst_23 {dimension_numbers = #tpu.dot_dimension_numbers<[2], [2], [1], [1], [0, 0, 0, 1, 1, 1], [0], [0]>} : vector<1x8x16xbf16>, vector<1x8x16xbf16>, vector<1x8x8xf32> -> vector<1x8x8xf32>
    "tpu.trace_stop"() : () -> ()
    %cst_24 = arith.constant dense<0xFF800000> : vector<1x8xf32>
    %62 = vector.multi_reduction <maximumf>, %61, %cst_24 [2] : vector<1x8x8xf32> to vector<1x8xf32>
    %63 = vector.shape_cast %62 : vector<1x8xf32> to vector<1x8x1xf32>
    %64 = vector.broadcast %63 : vector<1x8x1xf32> to vector<1x8x8xf32>
    %65 = arith.subf %61, %64 : vector<1x8x8xf32>
    %66 = math.exp %65 : vector<1x8x8xf32>
    %cst_25 = arith.constant dense<0.000000e+00> : vector<1x8xf32>
    %67 = vector.multi_reduction <add>, %66, %cst_25 [2] : vector<1x8x8xf32> to vector<1x8xf32>
    %68 = vector.shape_cast %67 : vector<1x8xf32> to vector<1x8x1xf32>
    %69 = tpu.reciprocal %68 {approx = true} : vector<1x8x1xf32> -> vector<1x8x1xf32>
    %70 = vector.broadcast %69 : vector<1x8x1xf32> to vector<1x8x8xf32>
    %71 = arith.mulf %66, %70 : vector<1x8x8xf32>
    %72 = arith.truncf %71 : vector<1x8x8xf32> to vector<1x8x8xbf16>
    "tpu.trace_start"() <{level = 10 : i32, message = "bqk,bkd->bqd"}> : () -> ()
    %cst_26 = arith.constant dense<0.000000e+00> : vector<1x8x16xf32>
    %73 = tpu.matmul %72, %60, %cst_26 {dimension_numbers = #tpu.dot_dimension_numbers<[2], [1], [1], [2], [0, 0, 0, 1, 1, 2], [0], [0]>} : vector<1x8x8xbf16>, vector<1x8x16xbf16>, vector<1x8x16xf32> -> vector<1x8x16xf32>
    "tpu.trace_stop"() : () -> ()
    %74 = vector.extract_strided_slice %52 {offsets = [0, 0, 16], sizes = [1, 8, 16], strides = [1, 1, 1]} : vector<1x8x32xf32> to vector<1x8x16xf32>
    %75 = arith.truncf %74 : vector<1x8x16xf32> to vector<1x8x16xbf16>
    %76 = vector.extract_strided_slice %53 {offsets = [0, 0, 16], sizes = [1, 8, 16], strides = [1, 1, 1]} : vector<1x8x32xf32> to vector<1x8x16xf32>
    %77 = arith.truncf %76 : vector<1x8x16xf32> to vector<1x8x16xbf16>
    %78 = vector.extract_strided_slice %54 {offsets = [0, 0, 16], sizes = [1, 8, 16], strides = [1, 1, 1]} : vector<1x8x32xf32> to vector<1x8x16xf32>
    %79 = arith.truncf %78 : vector<1x8x16xf32> to vector<1x8x16xbf16>
    "tpu.trace_start"() <{level = 10 : i32, message = "bqd,bkd->bqk"}> : () -> ()
    %cst_27 = arith.constant dense<0.000000e+00> : vector<1x8x8xf32>
    %80 = tpu.matmul %75, %77, %cst_27 {dimension_numbers = #tpu.dot_dimension_numbers<[2], [2], [1], [1], [0, 0, 0, 1, 1, 1], [0], [0]>} : vector<1x8x16xbf16>, vector<1x8x16xbf16>, vector<1x8x8xf32> -> vector<1x8x8xf32>
    "tpu.trace_stop"() : () -> ()
    %cst_28 = arith.constant dense<0xFF800000> : vector<1x8xf32>
    %81 = vector.multi_reduction <maximumf>, %80, %cst_28 [2] : vector<1x8x8xf32> to vector<1x8xf32>
    %82 = vector.shape_cast %81 : vector<1x8xf32> to vector<1x8x1xf32>
    %83 = vector.broadcast %82 : vector<1x8x1xf32> to vector<1x8x8xf32>
    %84 = arith.subf %80, %83 : vector<1x8x8xf32>
    %85 = math.exp %84 : vector<1x8x8xf32>
    %cst_29 = arith.constant dense<0.000000e+00> : vector<1x8xf32>
    %86 = vector.multi_reduction <add>, %85, %cst_29 [2] : vector<1x8x8xf32> to vector<1x8xf32>
    %87 = vector.shape_cast %86 : vector<1x8xf32> to vector<1x8x1xf32>
    %88 = tpu.reciprocal %87 {approx = true} : vector<1x8x1xf32> -> vector<1x8x1xf32>
    %89 = vector.broadcast %88 : vector<1x8x1xf32> to vector<1x8x8xf32>
    %90 = arith.mulf %85, %89 : vector<1x8x8xf32>
    %91 = arith.truncf %90 : vector<1x8x8xf32> to vector<1x8x8xbf16>
    "tpu.trace_start"() <{level = 10 : i32, message = "bqk,bkd->bqd"}> : () -> ()
    %cst_30 = arith.constant dense<0.000000e+00> : vector<1x8x16xf32>
    %92 = tpu.matmul %91, %79, %cst_30 {dimension_numbers = #tpu.dot_dimension_numbers<[2], [1], [1], [2], [0, 0, 0, 1, 1, 2], [0], [0]>} : vector<1x8x8xbf16>, vector<1x8x16xbf16>, vector<1x8x16xf32> -> vector<1x8x16xf32>
    "tpu.trace_stop"() : () -> ()
    %93 = tpu.concatenate %73, %92 in 2 : vector<1x8x16xf32>, vector<1x8x16xf32> -> vector<1x8x32xf32>
    %94 = vector.shape_cast %93 : vector<1x8x32xf32> to vector<8x32xf32>
    %95 = arith.truncf %94 : vector<8x32xf32> to vector<8x32xbf16>
    %cst_31 = arith.constant dense<0.000000e+00> : vector<8x32xf32>
    %96 = tpu.matmul %95, %51, %cst_31 {dimension_numbers = #tpu.dot_dimension_numbers<[1], [0], [0], [1], [0, 0, 1, 1], [], []>} : vector<8x32xbf16>, vector<32x32xbf16>, vector<8x32xf32> -> vector<8x32xf32>
    %97 = vector.broadcast %9 : vector<1x32xf32> to vector<8x32xf32>
    %98 = arith.addf %96, %97 : vector<8x32xf32>
    %99 = vector.shape_cast %98 : vector<8x32xf32> to vector<1x8x32xf32>
    %100 = arith.addf %3, %99 : vector<1x8x32xf32>
    %cst_32 = arith.constant dense<0.000000e+00> : vector<1x8xf32>
    %101 = vector.multi_reduction <add>, %100, %cst_32 [2] : vector<1x8x32xf32> to vector<1x8xf32>
    %102 = vector.shape_cast %101 : vector<1x8xf32> to vector<1x8x1xf32>
    %cst_33 = arith.constant 3.200000e+01 : f32
    %103 = vector.broadcast %cst_33 : f32 to vector<1x8x1xf32>
    %104 = arith.divf %102, %103 : vector<1x8x1xf32>
    %105 = vector.broadcast %104 : vector<1x8x1xf32> to vector<1x8x32xf32>
    %106 = arith.subf %100, %105 : vector<1x8x32xf32>
    %107 = arith.mulf %106, %106 : vector<1x8x32xf32>
    %cst_34 = arith.constant dense<0.000000e+00> : vector<1x8xf32>
    %108 = vector.multi_reduction <add>, %107, %cst_34 [2] : vector<1x8x32xf32> to vector<1x8xf32>
    %109 = vector.shape_cast %108 : vector<1x8xf32> to vector<1x8x1xf32>
    %cst_35 = arith.constant 3.200000e+01 : f32
    %110 = vector.broadcast %cst_35 : f32 to vector<1x8x1xf32>
    %111 = arith.divf %109, %110 : vector<1x8x1xf32>
    %112 = vector.broadcast %104 : vector<1x8x1xf32> to vector<1x8x32xf32>
    %113 = arith.subf %100, %112 : vector<1x8x32xf32>
    %cst_36 = arith.constant 9.99999974E-6 : f32
    %114 = vector.broadcast %cst_36 : f32 to vector<1x8x1xf32>
    %115 = arith.addf %111, %114 : vector<1x8x1xf32>
    %116 = math.rsqrt %115 : vector<1x8x1xf32>
    %117 = vector.broadcast %116 : vector<1x8x1xf32> to vector<1x8x32xf32>
    %118 = arith.mulf %113, %117 : vector<1x8x32xf32>
    %119 = vector.shape_cast %10 : vector<1x32xf32> to vector<1x1x32xf32>
    %120 = vector.broadcast %119 : vector<1x1x32xf32> to vector<1x8x32xf32>
    %121 = arith.mulf %118, %120 : vector<1x8x32xf32>
    %122 = vector.shape_cast %11 : vector<1x32xf32> to vector<1x1x32xf32>
    %123 = vector.broadcast %122 : vector<1x1x32xf32> to vector<1x8x32xf32>
    %124 = arith.addf %121, %123 : vector<1x8x32xf32>
    %125 = vector.shape_cast %124 : vector<1x8x32xf32> to vector<8x32xf32>
    %126 = arith.truncf %125 : vector<8x32xf32> to vector<8x32xbf16>
    %c0_37 = arith.constant 0 : index
    %c0_38 = arith.constant 0 : index
    %c0_39 = arith.constant 0 : index
    %127 = vector.load %arg8[%c0_37, %c0_38, %c0_39] : memref<1x32x32xbf16, #tpu.memory_space<vmem>>, vector<1x32x32xbf16>
    %128 = vector.shape_cast %127 : vector<1x32x32xbf16> to vector<32x32xbf16>
    %cst_40 = arith.constant dense<0.000000e+00> : vector<8x32xf32>
    %129 = tpu.matmul %126, %128, %cst_40 {dimension_numbers = #tpu.dot_dimension_numbers<[1], [0], [0], [1], [0, 0, 1, 1], [], []>} : vector<8x32xbf16>, vector<32x32xbf16>, vector<8x32xf32> -> vector<8x32xf32>
    %130 = vector.shape_cast %4 : vector<1x16x32xf32> to vector<16x32xf32>
    %131 = arith.truncf %130 : vector<16x32xf32> to vector<16x32xbf16>
    %c0_41 = arith.constant 0 : index
    %c0_42 = arith.constant 0 : index
    %c0_43 = arith.constant 0 : index
    %132 = vector.load %arg9[%c0_41, %c0_42, %c0_43] : memref<1x32x64xbf16, #tpu.memory_space<vmem>>, vector<1x32x64xbf16>
    %133 = vector.shape_cast %132 : vector<1x32x64xbf16> to vector<32x64xbf16>
    %cst_44 = arith.constant dense<0.000000e+00> : vector<16x64xf32>
    %134 = tpu.matmul %131, %133, %cst_44 {dimension_numbers = #tpu.dot_dimension_numbers<[1], [0], [0], [1], [0, 0, 1, 1], [], []>} : vector<16x32xbf16>, vector<32x64xbf16>, vector<16x64xf32> -> vector<16x64xf32>
    %135 = vector.extract_strided_slice %134 {offsets = [0, 0], sizes = [16, 32], strides = [1, 1]} : vector<16x64xf32> to vector<16x32xf32>
    %136 = vector.extract_strided_slice %134 {offsets = [0, 32], sizes = [16, 32], strides = [1, 1]} : vector<16x64xf32> to vector<16x32xf32>
    %c0_45 = arith.constant 0 : index
    %c0_46 = arith.constant 0 : index
    %c0_47 = arith.constant 0 : index
    %137 = vector.load %arg10[%c0_45, %c0_46, %c0_47] : memref<1x32x32xbf16, #tpu.memory_space<vmem>>, vector<1x32x32xbf16>
    %138 = vector.shape_cast %137 : vector<1x32x32xbf16> to vector<32x32xbf16>
    %139 = vector.shape_cast %129 : vector<8x32xf32> to vector<1x8x32xf32>
    %140 = vector.shape_cast %135 : vector<16x32xf32> to vector<1x16x32xf32>
    %141 = vector.shape_cast %136 : vector<16x32xf32> to vector<1x16x32xf32>
    %142 = vector.extract_strided_slice %139 {offsets = [0, 0, 0], sizes = [1, 8, 16], strides = [1, 1, 1]} : vector<1x8x32xf32> to vector<1x8x16xf32>
    %143 = arith.truncf %142 : vector<1x8x16xf32> to vector<1x8x16xbf16>
    %144 = vector.extract_strided_slice %140 {offsets = [0, 0, 0], sizes = [1, 16, 16], strides = [1, 1, 1]} : vector<1x16x32xf32> to vector<1x16x16xf32>
    %145 = arith.truncf %144 : vector<1x16x16xf32> to vector<1x16x16xbf16>
    %146 = vector.extract_strided_slice %141 {offsets = [0, 0, 0], sizes = [1, 16, 16], strides = [1, 1, 1]} : vector<1x16x32xf32> to vector<1x16x16xf32>
    %147 = arith.truncf %146 : vector<1x16x16xf32> to vector<1x16x16xbf16>
    "tpu.trace_start"() <{level = 10 : i32, message = "bqd,bkd->bqk"}> : () -> ()
    %cst_48 = arith.constant dense<0.000000e+00> : vector<1x8x16xf32>
    %148 = tpu.matmul %143, %145, %cst_48 {dimension_numbers = #tpu.dot_dimension_numbers<[2], [2], [1], [1], [0, 0, 0, 1, 1, 1], [0], [0]>} : vector<1x8x16xbf16>, vector<1x16x16xbf16>, vector<1x8x16xf32> -> vector<1x8x16xf32>
    "tpu.trace_stop"() : () -> ()
    %cst_49 = arith.constant dense<0xFF800000> : vector<1x8xf32>
    %149 = vector.multi_reduction <maximumf>, %148, %cst_49 [2] : vector<1x8x16xf32> to vector<1x8xf32>
    %150 = vector.shape_cast %149 : vector<1x8xf32> to vector<1x8x1xf32>
    %151 = vector.broadcast %150 : vector<1x8x1xf32> to vector<1x8x16xf32>
    %152 = arith.subf %148, %151 : vector<1x8x16xf32>
    %153 = math.exp %152 : vector<1x8x16xf32>
    %cst_50 = arith.constant dense<0.000000e+00> : vector<1x8xf32>
    %154 = vector.multi_reduction <add>, %153, %cst_50 [2] : vector<1x8x16xf32> to vector<1x8xf32>
    %155 = vector.shape_cast %154 : vector<1x8xf32> to vector<1x8x1xf32>
    %156 = tpu.reciprocal %155 {approx = true} : vector<1x8x1xf32> -> vector<1x8x1xf32>
    %157 = vector.broadcast %156 : vector<1x8x1xf32> to vector<1x8x16xf32>
    %158 = arith.mulf %153, %157 : vector<1x8x16xf32>
    %159 = arith.truncf %158 : vector<1x8x16xf32> to vector<1x8x16xbf16>
    "tpu.trace_start"() <{level = 10 : i32, message = "bqk,bkd->bqd"}> : () -> ()
    %cst_51 = arith.constant dense<0.000000e+00> : vector<1x8x16xf32>
    %160 = tpu.matmul %159, %147, %cst_51 {dimension_numbers = #tpu.dot_dimension_numbers<[2], [1], [1], [2], [0, 0, 0, 1, 1, 2], [0], [0]>} : vector<1x8x16xbf16>, vector<1x16x16xbf16>, vector<1x8x16xf32> -> vector<1x8x16xf32>
    "tpu.trace_stop"() : () -> ()
    %161 = vector.extract_strided_slice %139 {offsets = [0, 0, 16], sizes = [1, 8, 16], strides = [1, 1, 1]} : vector<1x8x32xf32> to vector<1x8x16xf32>
    %162 = arith.truncf %161 : vector<1x8x16xf32> to vector<1x8x16xbf16>
    %163 = vector.extract_strided_slice %140 {offsets = [0, 0, 16], sizes = [1, 16, 16], strides = [1, 1, 1]} : vector<1x16x32xf32> to vector<1x16x16xf32>
    %164 = arith.truncf %163 : vector<1x16x16xf32> to vector<1x16x16xbf16>
    %165 = vector.extract_strided_slice %141 {offsets = [0, 0, 16], sizes = [1, 16, 16], strides = [1, 1, 1]} : vector<1x16x32xf32> to vector<1x16x16xf32>
    %166 = arith.truncf %165 : vector<1x16x16xf32> to vector<1x16x16xbf16>
    "tpu.trace_start"() <{level = 10 : i32, message = "bqd,bkd->bqk"}> : () -> ()
    %cst_52 = arith.constant dense<0.000000e+00> : vector<1x8x16xf32>
    %167 = tpu.matmul %162, %164, %cst_52 {dimension_numbers = #tpu.dot_dimension_numbers<[2], [2], [1], [1], [0, 0, 0, 1, 1, 1], [0], [0]>} : vector<1x8x16xbf16>, vector<1x16x16xbf16>, vector<1x8x16xf32> -> vector<1x8x16xf32>
    "tpu.trace_stop"() : () -> ()
    %cst_53 = arith.constant dense<0xFF800000> : vector<1x8xf32>
    %168 = vector.multi_reduction <maximumf>, %167, %cst_53 [2] : vector<1x8x16xf32> to vector<1x8xf32>
    %169 = vector.shape_cast %168 : vector<1x8xf32> to vector<1x8x1xf32>
    %170 = vector.broadcast %169 : vector<1x8x1xf32> to vector<1x8x16xf32>
    %171 = arith.subf %167, %170 : vector<1x8x16xf32>
    %172 = math.exp %171 : vector<1x8x16xf32>
    %cst_54 = arith.constant dense<0.000000e+00> : vector<1x8xf32>
    %173 = vector.multi_reduction <add>, %172, %cst_54 [2] : vector<1x8x16xf32> to vector<1x8xf32>
    %174 = vector.shape_cast %173 : vector<1x8xf32> to vector<1x8x1xf32>
    %175 = tpu.reciprocal %174 {approx = true} : vector<1x8x1xf32> -> vector<1x8x1xf32>
    %176 = vector.broadcast %175 : vector<1x8x1xf32> to vector<1x8x16xf32>
    %177 = arith.mulf %172, %176 : vector<1x8x16xf32>
    %178 = arith.truncf %177 : vector<1x8x16xf32> to vector<1x8x16xbf16>
    "tpu.trace_start"() <{level = 10 : i32, message = "bqk,bkd->bqd"}> : () -> ()
    %cst_55 = arith.constant dense<0.000000e+00> : vector<1x8x16xf32>
    %179 = tpu.matmul %178, %166, %cst_55 {dimension_numbers = #tpu.dot_dimension_numbers<[2], [1], [1], [2], [0, 0, 0, 1, 1, 2], [0], [0]>} : vector<1x8x16xbf16>, vector<1x16x16xbf16>, vector<1x8x16xf32> -> vector<1x8x16xf32>
    "tpu.trace_stop"() : () -> ()
    %180 = tpu.concatenate %160, %179 in 2 : vector<1x8x16xf32>, vector<1x8x16xf32> -> vector<1x8x32xf32>
    %181 = vector.shape_cast %180 : vector<1x8x32xf32> to vector<8x32xf32>
    %182 = arith.truncf %181 : vector<8x32xf32> to vector<8x32xbf16>
    %cst_56 = arith.constant dense<0.000000e+00> : vector<8x32xf32>
    %183 = tpu.matmul %182, %138, %cst_56 {dimension_numbers = #tpu.dot_dimension_numbers<[1], [0], [0], [1], [0, 0, 1, 1], [], []>} : vector<8x32xbf16>, vector<32x32xbf16>, vector<8x32xf32> -> vector<8x32xf32>
    %184 = vector.broadcast %12 : vector<1x32xf32> to vector<8x32xf32>
    %185 = arith.addf %183, %184 : vector<8x32xf32>
    %186 = vector.shape_cast %185 : vector<8x32xf32> to vector<1x8x32xf32>
    %187 = arith.addf %100, %186 : vector<1x8x32xf32>
    %cst_57 = arith.constant dense<0.000000e+00> : vector<1x8xf32>
    %188 = vector.multi_reduction <add>, %187, %cst_57 [2] : vector<1x8x32xf32> to vector<1x8xf32>
    %189 = vector.shape_cast %188 : vector<1x8xf32> to vector<1x8x1xf32>
    %cst_58 = arith.constant 3.200000e+01 : f32
    %190 = vector.broadcast %cst_58 : f32 to vector<1x8x1xf32>
    %191 = arith.divf %189, %190 : vector<1x8x1xf32>
    %192 = vector.broadcast %191 : vector<1x8x1xf32> to vector<1x8x32xf32>
    %193 = arith.subf %187, %192 : vector<1x8x32xf32>
    %194 = arith.mulf %193, %193 : vector<1x8x32xf32>
    %cst_59 = arith.constant dense<0.000000e+00> : vector<1x8xf32>
    %195 = vector.multi_reduction <add>, %194, %cst_59 [2] : vector<1x8x32xf32> to vector<1x8xf32>
    %196 = vector.shape_cast %195 : vector<1x8xf32> to vector<1x8x1xf32>
    %cst_60 = arith.constant 3.200000e+01 : f32
    %197 = vector.broadcast %cst_60 : f32 to vector<1x8x1xf32>
    %198 = arith.divf %196, %197 : vector<1x8x1xf32>
    %199 = vector.broadcast %191 : vector<1x8x1xf32> to vector<1x8x32xf32>
    %200 = arith.subf %187, %199 : vector<1x8x32xf32>
    %cst_61 = arith.constant 9.99999974E-6 : f32
    %201 = vector.broadcast %cst_61 : f32 to vector<1x8x1xf32>
    %202 = arith.addf %198, %201 : vector<1x8x1xf32>
    %203 = math.rsqrt %202 : vector<1x8x1xf32>
    %204 = vector.broadcast %203 : vector<1x8x1xf32> to vector<1x8x32xf32>
    %205 = arith.mulf %200, %204 : vector<1x8x32xf32>
    %206 = vector.shape_cast %13 : vector<1x32xf32> to vector<1x1x32xf32>
    %207 = vector.broadcast %206 : vector<1x1x32xf32> to vector<1x8x32xf32>
    %208 = arith.mulf %205, %207 : vector<1x8x32xf32>
    %209 = vector.shape_cast %14 : vector<1x32xf32> to vector<1x1x32xf32>
    %210 = vector.broadcast %209 : vector<1x1x32xf32> to vector<1x8x32xf32>
    %211 = arith.addf %208, %210 : vector<1x8x32xf32>
    %212 = vector.shape_cast %211 : vector<1x8x32xf32> to vector<8x32xf32>
    %213 = arith.truncf %212 : vector<8x32xf32> to vector<8x32xbf16>
    %c0_62 = arith.constant 0 : index
    %c0_63 = arith.constant 0 : index
    %c0_64 = arith.constant 0 : index
    %214 = vector.load %arg11[%c0_62, %c0_63, %c0_64] : memref<1x32x64xbf16, #tpu.memory_space<vmem>>, vector<1x32x64xbf16>
    %215 = vector.shape_cast %214 : vector<1x32x64xbf16> to vector<32x64xbf16>
    %cst_65 = arith.constant dense<0.000000e+00> : vector<8x64xf32>
    %216 = tpu.matmul %213, %215, %cst_65 {dimension_numbers = #tpu.dot_dimension_numbers<[1], [0], [0], [1], [0, 0, 1, 1], [], []>} : vector<8x32xbf16>, vector<32x64xbf16>, vector<8x64xf32> -> vector<8x64xf32>
    %217 = vector.broadcast %17 : vector<1x64xf32> to vector<8x64xf32>
    %218 = arith.addf %216, %217 : vector<8x64xf32>
    %cst_66 = arith.constant 5.000000e-01 : f32
    %219 = vector.broadcast %cst_66 : f32 to vector<8x64xf32>
    %220 = arith.mulf %219, %218 : vector<8x64xf32>
    %cst_67 = arith.constant 0.707106769 : f32
    %221 = vector.broadcast %cst_67 : f32 to vector<8x64xf32>
    %222 = arith.mulf %218, %221 : vector<8x64xf32>
    %223 = math.erf %222 : vector<8x64xf32>
    %cst_68 = arith.constant 1.000000e+00 : f32
    %224 = vector.broadcast %cst_68 : f32 to vector<8x64xf32>
    %225 = arith.addf %224, %223 : vector<8x64xf32>
    %226 = arith.mulf %220, %225 : vector<8x64xf32>
    %227 = arith.truncf %226 : vector<8x64xf32> to vector<8x64xbf16>
    %c0_69 = arith.constant 0 : index
    %c0_70 = arith.constant 0 : index
    %c0_71 = arith.constant 0 : index
    %228 = vector.load %arg12[%c0_69, %c0_70, %c0_71] : memref<1x64x32xbf16, #tpu.memory_space<vmem>>, vector<1x64x32xbf16>
    %229 = vector.shape_cast %228 : vector<1x64x32xbf16> to vector<64x32xbf16>
    %cst_72 = arith.constant dense<0.000000e+00> : vector<8x32xf32>
    %230 = tpu.matmul %227, %229, %cst_72 {dimension_numbers = #tpu.dot_dimension_numbers<[1], [0], [0], [1], [0, 0, 1, 1], [], []>} : vector<8x64xbf16>, vector<64x32xbf16>, vector<8x32xf32> -> vector<8x32xf32>
    %231 = vector.broadcast %15 : vector<1x32xf32> to vector<8x32xf32>
    %232 = arith.addf %230, %231 : vector<8x32xf32>
    %233 = vector.shape_cast %232 : vector<8x32xf32> to vector<1x8x32xf32>
    %234 = arith.addf %187, %233 : vector<1x8x32xf32>
    %c1_i32 = arith.constant 1 : i32
    %235 = arith.cmpi ne, %arg1, %c1_i32 : i32
    %236 = arith.extui %235 : i1 to i32
    %c0_i32_73 = arith.constant 0 : i32
    %237 = arith.cmpi ne, %236, %c0_i32_73 : i32
    scf.if %237 {
      %c0_76 = arith.constant 0 : index
      %c0_77 = arith.constant 0 : index
      %c0_78 = arith.constant 0 : index
      %241 = vector.load %arg14[%c0_76, %c0_77, %c0_78] : memref<1x8x32xf32, #tpu.memory_space<vmem>>, vector<1x8x32xf32>
      tpu.vector_store %arg14[%c0_76, %c0_77, %c0_78], %234 {strides = array<i32>} : memref<1x8x32xf32, #tpu.memory_space<vmem>>, vector<1x8x32xf32>,
    } else {
    }
    %c1_i32_74 = arith.constant 1 : i32
    %238 = arith.cmpi eq, %arg1, %c1_i32_74 : i32
    %239 = arith.extui %238 : i1 to i32
    %c0_i32_75 = arith.constant 0 : i32
    %240 = arith.cmpi ne, %239, %c0_i32_75 : i32
    scf.if %240 {
      %c0_76 = arith.constant 0 : index
      %c0_77 = arith.constant 0 : index
      %c0_78 = arith.constant 0 : index
      %241 = vector.load %arg13[%c0_76, %c0_77, %c0_78] : memref<1x8x32xf32, #tpu.memory_space<vmem>>, vector<1x8x32xf32>
      tpu.vector_store %arg13[%c0_76, %c0_77, %c0_78], %234 {strides = array<i32>} : memref<1x8x32xf32, #tpu.memory_space<vmem>>, vector<1x8x32xf32>,
    } else {
    }
    return
  }
  func.func @transform_0(%arg0: i32, %arg1: i32) -> (i32, i32, i32) {
    %c0_i32 = arith.constant 0 : i32
    %c0_i32_0 = arith.constant 0 : i32
    %c0_i32_1 = arith.constant 0 : i32
    return %arg0, %c0_i32, %c0_i32_0 : i32, i32, i32
  }
  func.func @transform_1(%arg0: i32, %arg1: i32) -> (i32, i32, i32) {
    %c0_i32 = arith.constant 0 : i32
    %c0_i32_0 = arith.constant 0 : i32
    %c0_i32_1 = arith.constant 0 : i32
    return %arg0, %c0_i32, %c0_i32_0 : i32, i32, i32
  }
  func.func @transform_2(%arg0: i32, %arg1: i32) -> (i32, i32, i32) {
    %c0_i32 = arith.constant 0 : i32
    %c0_i32_0 = arith.constant 0 : i32
    %c0_i32_1 = arith.constant 0 : i32
    return %arg1, %c0_i32, %c0_i32_0 : i32, i32, i32
  }
  func.func @transform_3(%arg0: i32, %arg1: i32) -> (i32, i32, i32) {
    %c0_i32 = arith.constant 0 : i32
    %c0_i32_0 = arith.constant 0 : i32
    %c0_i32_1 = arith.constant 0 : i32
    return %arg1, %c0_i32, %c0_i32_0 : i32, i32, i32
  }
  func.func @transform_4(%arg0: i32, %arg1: i32) -> (i32, i32, i32) {
    %c0_i32 = arith.constant 0 : i32
    %c0_i32_0 = arith.constant 0 : i32
    %c0_i32_1 = arith.constant 0 : i32
    return %arg1, %c0_i32, %c0_i32_0 : i32, i32, i32
  }
  func.func @transform_5(%arg0: i32, %arg1: i32) -> (i32, i32, i32) {
    %c0_i32 = arith.constant 0 : i32
    %c0_i32_0 = arith.constant 0 : i32
    %c0_i32_1 = arith.constant 0 : i32
    return %arg1, %c0_i32, %c0_i32_0 : i32, i32, i32
  }
  func.func @transform_6(%arg0: i32, %arg1: i32) -> (i32, i32, i32) {
    %c0_i32 = arith.constant 0 : i32
    %c0_i32_0 = arith.constant 0 : i32
    %c0_i32_1 = arith.constant 0 : i32
    return %arg1, %c0_i32, %c0_i32_0 : i32, i32, i32
  }
  func.func @transform_7(%arg0: i32, %arg1: i32) -> (i32, i32, i32) {
    %c0_i32 = arith.constant 0 : i32
    %c0_i32_0 = arith.constant 0 : i32
    %c0_i32_1 = arith.constant 0 : i32
    return %arg1, %c0_i32, %c0_i32_0 : i32, i32, i32
  }
  func.func @transform_8(%arg0: i32, %arg1: i32) -> (i32, i32, i32) {
    %c0_i32 = arith.constant 0 : i32
    %c0_i32_0 = arith.constant 0 : i32
    %c0_i32_1 = arith.constant 0 : i32
    return %arg1, %c0_i32, %c0_i32_0 : i32, i32, i32
  }
  func.func @transform_9(%arg0: i32, %arg1: i32) -> (i32, i32, i32) {
    %c0_i32 = arith.constant 0 : i32
    %c0_i32_0 = arith.constant 0 : i32
    %c0_i32_1 = arith.constant 0 : i32
    return %arg1, %c0_i32, %c0_i32_0 : i32, i32, i32
  }
  func.func @transform_10(%arg0: i32, %arg1: i32) -> (i32, i32, i32) {
    %c0_i32 = arith.constant 0 : i32
    %c0_i32_0 = arith.constant 0 : i32
    %c0_i32_1 = arith.constant 0 : i32
    return %arg1, %c0_i32, %c0_i32_0 : i32, i32, i32
  }
  func.func @transform_11(%arg0: i32, %arg1: i32) -> (i32, i32, i32) {
    %c0_i32 = arith.constant 0 : i32
    %c0_i32_0 = arith.constant 0 : i32
    %c0_i32_1 = arith.constant 0 : i32
    return %arg0, %c0_i32, %c0_i32_0 : i32, i32, i32
  }
}

</mosaic_0001>

<bundles_post_ra>
// kernel: tpu_custom_call.1
= control target key start
LH: loop header
LB: loop body
LE: loop exit
PB: predicated region body
PF: predicated region fallthrough
CT: control target
= control target key end

     0   :  { %s3327_s0 = inlined_call_operand.hbm [shape: f32[2,8,32], index: 0, kind: input, shape index: {}]   ;;  %s3328_s1 = inlined_call_operand.vmem [shape: f32[2,16,32], index: 1, kind: input, shape index: {}]   ;;  %s3329_s2 = inlined_call_operand.vmem [shape: f32[2,9,32], index: 2, kind: input, shape index: {}]   ;;  %s3330_s3 = inlined_call_operand.hbm [shape: f32[2,1,64], index: 3, kind: input, shape index: {}]   ;;  %s3331_s4 = inlined_call_operand.vmem [shape: bf16[2,32,96], index: 4, kind: input, shape index: {}]   ;;  %s3332_s5 = inlined_call_operand.vmem [shape: bf16[2,32,32], index: 5, kind: input, shape index: {}]   ;;  %s3333_s6 = inlined_call_operand.vmem [shape: bf16[2,32,32], index: 6, kind: input, shape index: {}]   ;;  %s3334_s7 = inlined_call_operand.hbm [shape: bf16[2,32,64], index: 7, kind: input, shape index: {}]   ;;  %s3335_s8 = inlined_call_operand.hbm [shape: bf16[2,32,32], index: 8, kind: input, shape index: {}]   ;;  %s3336_s9 = inlined_call_operand.hbm [shape: bf16[2,32,64], index: 9, kind: input, shape index: {}]   ;;  %s3337_s10 = inlined_call_operand.vmem [shape: bf16[2,64,32], index: 10, kind: input, shape index: {}]   ;;  %s3338_s11 = inlined_call_operand.hbm [shape: f32[2,8,32], index: 11, kind: output, shape index: {}]  }
   0x1   :  { %3367 = sst [smem:[#allocation31_spill]] %s3327_s0 }
   0x2   :  { %3368 = sst [smem:[#allocation32_spill]] %s3328_s1 }
   0x3   :  { %3369 = sst [smem:[#allocation33_spill]] %s3329_s2 }
   0x4   :  { %3370 = sst [smem:[#allocation34_spill]] %s3330_s3 }
   0x5   :  { %3371 = sst [smem:[#allocation35_spill]] %s3331_s4 }
   0x6   :  { %3372 = sst [smem:[#allocation36_spill]] %s3332_s5 }
   0x7   :  { %3373 = sst [smem:[#allocation37_spill]] %s3333_s6 }
   0x8   :  { %3374 = sst [smem:[#allocation38_spill]] %s3334_s7 }
   0x9   :  { %3375 = sst [smem:[#allocation39_spill]] %s3335_s8 }
   0xa   :  { %3376 = sst [smem:[#allocation40_spill]] %s3336_s9 }
   0xb   :  { %3377 = sst [smem:[#allocation41_spill]] %s3337_s10 }
   0xc   :  { %3378 = sst [smem:[#allocation42_spill]] %s3338_s11 }
   0xd   :  { %16 = vsyncpa [#allocation4], 0 }
   0xe   :  { %18 = vsyncpa [#allocation4 + $0x1], 0 }
   0xf   :  { %19 = vsyncpa [#allocation7], 0 }
  0x10   :  { %21 = vsyncpa [#allocation7 + $0x1], 0 }
  0x11   :  { %22 = vsyncpa [#allocation10], 0 }
  0x12   :  { %24 = vsyncpa [#allocation10 + $0x1], 0 }
  0x13   :  { %25 = vsyncpa [#allocation5], 0 }
  0x14   :  { %27 = vsyncpa [#allocation5 + $0x1], 0  ;;  %s2700_s17 = smov 0   ;;  %s2702_s18 = smov 0  }
  0x15   :  { %s2704_s19 = smov 0   ;;  %s2706_s20 = smov 0  }
  0x16   :  { %s2708_s21 = smov 0   ;;  %s2710_s22 = smov 0  }
  0x17   :  { %s2712_s23 = smov 0   ;;  %s2714_s24 = smov 0  }
  0x18   :  { %s2716_s25 = smov 0   ;;  %s2718_s26 = smov 0  }
  0x19   :  { %s2720_s27 = smov 0  }
  0x1a LB: > { %3379 = sst [smem:[#allocation17_spill]] %s2586_s18  ;;  %s42_s28 = sadd.s32 1, %s2614_s25  ;;  %s2622_s27 = sphi %s2720_s27, %s33_s27   ;;  %s2618_s26 = sphi %s2718_s26, %s3450_s26   ;;  %s2614_s25 = sphi %s2716_s25, %s3449_s25   ;;  %s2610_s24 = sphi %s2714_s24, %s3448_s24   ;;  %s2606_s23 = sphi %s2712_s23, %s3447_s23   ;;  %s2602_s22 = sphi %s2710_s22, %s3446_s22   ;;  %s2598_s21 = sphi %s2708_s21, %s3452_s21   ;;  %s2594_s20 = sphi %s2706_s20, %s3451_s20   ;;  %s2590_s19 = sphi %s2704_s19, %s3444_s19   ;;  %s2586_s18 = sphi %s2702_s18, %s3443_s18   ;;  %s2582_s17 = sphi %s2700_s17, %s3442_s17  }
  0x1b   : > { %3380 = sst [smem:[#allocation18_spill]] %s2590_s19  ;;  %p3344_p0 = scmp.eq.s32.totalorder %s2622_s27, 0 }
  0x1c   : > { %3381 = sst [smem:[#allocation19_spill]] %s2594_s20  ;;  %p2757_p1 = scmp.ge.s32.totalorder %s42_s28, 2 }
  0x1d   : > { %3382 = sst [smem:[#allocation20_spill]] %s2602_s22  ;;  %s130_s30 = sadd.s32 1, %s2590_s19 }
  0x1e   : > { %3383 = sst [smem:[#allocation21_spill]] %s2606_s23  ;;  %p137_p2 = scmp.ne.s32.totalorder %s2590_s19, %s2586_s18 }
  0x1f   : > { %3384 = sst [smem:[#allocation22_spill]] %s2610_s24  ;;  %s3454_s28 = smov (%p2757_p1, %s42_s28), 0 }
  0x20   : > { %3385 = sst [smem:[#allocation23_spill]] %s2614_s25  ;;  %p139_p4 = por %p137_p2, %p3344_p0 }
  0x21   : > { %3386 = sst [smem:[#allocation24_spill]] %s2618_s26  ;;  %s127_s12 = ssub.s32 %s2614_s25, %s3454_s28 }
  0x22   : > { %s3387_s29 = scalar_select %p2757_p1, 1, 0 }
  0x23   : > { %3388 = sst [smem:[#allocation25_spill]] %s3454_s28  ;;  %p3342_p5 = scmp.lt.s32.totalorder %s2622_s27, 4 }
  0x24   : > { %p128_p6 = scmp.eq.s32.totalorder %s127_s12, 0  ;;  %s3343_s13 = sand.u32 1, %s2622_s27  }
  0x25   : > { %s411_s14 = sand.u32 1, %s2590_s19   ;;  %s1946_s16 = sshll.u32 %s2614_s25, 4 }
  0x26   : > { %s2778_s15 = scalar_select %p128_p6, %s2590_s19, %s130_s30  }
  0x27   : > { %s3390_s3 = sld [smem:[#allocation34_spill]]  ;;  %s412_s5 = scalar_lea.vmem [#allocation6], %s411_s14 }
  0x28   : > { %3389 = sst [smem:[#allocation26_spill]] %s2778_s15  ;;  %s419_s4 = sshll.u32 %s412_s5, 4  ;;  %s2786_s4 = int_to_ptr.vmem [resolvable:$true] %s419_s4 }
  0x29   : > { %p2790_p7 = pnand %p3342_p5, %p139_p4  ;;  %s2794_s30 = sshll.u32 %s411_s14, 4 }
  0x2a   : > { %s2798_s10 = scalar_lea.sflag [#allocation7], %s3343_s13 }
  0x2b   : > { %s3391_s12 = scalar_select %p2790_p7, 1, 0 }
  0x2c   : > { %p2804_p9 = pneg %p2790_p7 }
  0x2d   : > { %s2784_s6 = scalar_lea.hbm %s3390_s3, %s1946_s16  ;;  %s2347_s15 = scalar_lea.hbm %s3390_s3, 32 }
  0x2e   : > { %s2342_s11 = scalar_lea.hbm %s2784_s6, 16  ;;  %p2348_p12 = scmp.lt.u32.totalorder %s2784_s6, %s3390_s3 }
  0x2f   : > { %p2343_p8 = scmp.ne.s32.totalorder %s2784_s6, %s2342_s11  ;;  %p2349_p13 = scmp.lt.u32.totalorder %s2347_s15, %s2342_s11 }
  0x30   : > { %p2351_p4 = scmp.lt.u32.totalorder %s2342_s11, %s2784_s6 }
  0x31   : > { %p2345_p10 = pnand %p2804_p9, %p2343_p8  ;;  %p2350_p2 = por %p2349_p13, %p2348_p12 }
  0x33   : > { %p2346_p11 = pneg %p2345_p10  ;;  %p2352_p6 = por %p2351_p4, %p2350_p2 }
  0x35   : > { %p2353_p5 = pnand %p2352_p6, %p2346_p11 }
  0x37   : > { %2356 = shalt.err (!%p2353_p5)
}
  0x38   : > { %s2357_s13 = scalar_lea.vmem %s2786_s4, 16  ;;  %s2624_s28 = smov [#allocation6]  }
  0x39   : > { %p2358_p8 = scmp.ne.s32.totalorder %s2786_s4, %s2357_s13  ;;  %s2362_s5 = sshll.u32 %s2624_s28, 4  ;;  %s2363_s5 = int_to_ptr.vmem [resolvable:$false] %s2362_s5 }
  0x3a   : > { %s2364_s19 = scalar_lea.vmem %s2363_s5, 32  ;;  %p2365_p0 = scmp.lt.s32.totalorder %s2786_s4, %s2363_s5 }
  0x3b   : > { %p2360_p10 = pnand %p2358_p8, %p2804_p9  ;;  %p2366_p1 = scmp.lt.s32.totalorder %s2364_s19, %s2357_s13 }
  0x3d   : > { %p2361_p3 = pneg %p2360_p10  ;;  %p2367_p12 = por %p2366_p1, %p2365_p0 }
  0x3f   : > { %p2368_p13 = pnand %p2367_p12, %p2361_p3 }
  0x41   : > { %2371 = shalt.err (!%p2368_p13)
}
  0x42   : > { %2188 = dma.hbm_to_vmem [thread:$0]  (!%p2790_p7), %s2784_s6, 16, %s2786_s4, %s2798_s10  }
  0x43   : > { %s454_s15 = scalar_lea.vmem [#allocation8], %s2794_s30  ;;  %s475_s13 = scalar_lea.vmem [#allocation9], %s2794_s30 }
  0x44   : > { %s461_s11 = sshll.u32 %s454_s15, 4  ;;  %s482_s14 = sshll.u32 %s475_s13, 4  ;;  %s2829_s11 = int_to_ptr.vmem [resolvable:$true] %s461_s11  ;;  %s2850_s14 = int_to_ptr.vmem [resolvable:$true] %s482_s14 }
  0x45   : > { %p1956_p0 = scmp.ge.s32.totalorder %s2622_s27, 1  ;;  %s496_s28 = scalar_lea.vmem [#allocation11], %s2794_s30 }
  0x46   : > { %s503_s5 = sshll.u32 %s496_s28, 4  ;;  %p519_p1 = scmp.lt.s32.totalorder %s2622_s27, 5  ;;  %s2835_s5 = int_to_ptr.vmem [resolvable:$true] %s503_s5 }
  0x47   : > { %s2838_s19 = sshll.u32 %s2614_s25, 8  ;;  %s3394_s8 = sld [smem:[#allocation39_spill]] }
  0x48   : > { %p2840_p3 = pnand %p1956_p0, %p519_p1  ;;  %s3395_s30 = sand.u32 1, %s2622_s27  }
  0x49   : > { %s2854_s13 = scalar_lea.sflag [#allocation10], %s3395_s30 }
  0x4a   : > { %s3393_s3 = scalar_select %p2840_p3, 1, 0 }
  0x4d   : > { %s2848_s15 = scalar_lea.hbm %s3394_s8, %s2838_s19  ;;  %s2377_s4 = scalar_lea.hbm %s3394_s8, 512 }
  0x4e   : > { %s2372_s28 = scalar_lea.hbm %s2848_s15, 256  ;;  %p2378_p4 = scmp.lt.u32.totalorder %s2848_s15, %s3394_s8 }
  0x4f   : > { %p2373_p5 = scmp.ne.s32.totalorder %s2848_s15, %s2372_s28  ;;  %p2379_p6 = scmp.lt.u32.totalorder %s2377_s4, %s2372_s28 }
  0x50   : > { %p2381_p10 = scmp.lt.u32.totalorder %s2372_s28, %s2848_s15 }
  0x51   : > { %p2375_p11 = pnand %p2373_p5, %p2804_p9  ;;  %p2380_p8 = por %p2379_p6, %p2378_p4 }
  0x53   : > { %p2376_p2 = pneg %p2375_p11  ;;  %p2382_p12 = por %p2381_p10, %p2380_p8 }
  0x55   : > { %p2383_p13 = pnand %p2382_p12, %p2376_p2 }
  0x57   : > { %2386 = shalt.err (!%p2383_p13)
}
  0x58   : > { %s2387_s30 = scalar_lea.vmem %s2850_s14, 256  ;;  %s2625_s2 = smov [#allocation9]  }
  0x59   : > { %p2388_p0 = scmp.ne.s32.totalorder %s2850_s14, %s2387_s30  ;;  %s2392_s25 = sshll.u32 %s2625_s2, 4  ;;  %s2393_s25 = int_to_ptr.vmem [resolvable:$false] %s2392_s25 }
  0x5a   : > { %s2394_s1 = scalar_lea.vmem %s2393_s25, 512  ;;  %p2395_p11 = scmp.lt.s32.totalorder %s2850_s14, %s2393_s25 }
  0x5b   : > { %p2390_p1 = pnand %p2388_p0, %p2804_p9  ;;  %p2396_p3 = scmp.lt.s32.totalorder %s2394_s1, %s2387_s30 }
  0x5d   : > { %p2391_p5 = pneg %p2390_p1  ;;  %p2397_p4 = por %p2396_p3, %p2395_p11 }
  0x5f   : > { %p2398_p6 = pnand %p2397_p4, %p2391_p5 }
  0x61   : > { %2401 = shalt.err (!%p2398_p6)
}
  0x62   : > { %s3347_s28 = smov 64   ;;  %s3349_s4 = smov 4  }
  0x63   : > { %2194 = dma.hbm_to_vmem [thread:$0]  (!%p2790_p7), %s2848_s15, 256, %s2850_s14, %s2854_s13, %s3347_s28, %s3347_s28, %s3349_s4  }
  0x64   : > { %s2882_s6 = sadd.s32 4294967295, %s2622_s27   ;;  %s1941_s30 = sadd.s32 4294967294, %s2622_s27  }
  0x65   : > { %s45_s2 = sadd.s32 1, %s2618_s26  ;;  %p3396_p3 = scmp.ne.s32.totalorder %s3387_s29, 0 }
  0x66   : > { %s52_s25 = sadd.s32 1, %s2602_s22  ;;  %p59_p2 = scmp.ne.s32.totalorder %s2602_s22, %s2598_s21 }
  0x67   : > { %s3456_s2 = smov (!%p3396_p3, %s45_s2), %s2618_s26  ;;  %p65_p10 = scmp.ne.s32.totalorder %s2598_s21, %s2594_s20 }
  0x68   : > { %p47_p8 = scmp.ge.s32.totalorder %s3456_s2, 2  ;;  %p3397_p12 = scmp.eq.s32.totalorder %s2622_s27, 0 }
  0x69   : > { %p66_p0 = scmp.eq.s32.totalorder %s2882_s6, 0  ;;  %p3401_p5 = scmp.ne.s32.totalorder %s2586_s18, %s2582_s17 }
  0x6a   : > { %p2896_p13 = por %p3397_p12, %p59_p2  ;;  %s3458_s2 = smov (%p47_p8, %s3456_s2), 0 }
  0x6b   : > { %3399 = sst [smem:[#allocation27_spill]] %s3458_s2  ;;  %p2906_p1 = por %p66_p0, %p65_p10 }
  0x6c   : > { %p2913_p11 = por %p3401_p5, %p66_p0  ;;  %s49_s1 = ssub.s32 %s2618_s26, %s3458_s2 }
  0x6d   : > { %s3400_s29 = scalar_select %p2906_p1, 1, 0 }
  0x6e   : > { %s3402_s15 = scalar_select %p2913_p11, 1, 0 }
  0x6f   : > { %p349_p4 = scmp.eq.s32.totalorder %s2882_s6, 3  ;;  %p50_p6 = scmp.eq.s32.totalorder %s49_s1, 0 }
  0x70   : > { %3403 = sst [smem:[#allocation28_spill]] %s3402_s15  ;;  %p355_p3 = scmp.eq.s32.totalorder %s1941_s30, 3 }
  0x71   : > { %p2920_p8 = por %p349_p4, %p59_p2  ;;  %s375_s4 = sand.u32 1, %s2602_s22  }
  0x72   : > { %s2926_s8 = scalar_select %p50_p6, %s2602_s22, %s52_s25  }
  0x73   : > { %s3404_s28 = scalar_select %p2920_p8, 1, 0 }
  0x74   : > { %3405 = sst [smem:[#allocation29_spill]] %s2926_s8  ;;  %p2931_p12 = por %p355_p3, %p65_p10 }
  0x75   : > { %s1944_s23 = sshll.u32 %s375_s4, 3  ;;  %s1945_s24 = sshll.u32 %s2618_s26, 7 }
  0x76   : > { %s3406_s17 = scalar_select %p2931_p12, 1, 0 }
  0x77   : > { %s3408_s0 = sld [smem:[#allocation31_spill]]  ;;  %s379_s30 = scalar_lea.vmem [#allocation3], %s1944_s23 }
  0x78   : > { %3407 = sst [smem:[#allocation30_spill]] %s3406_s17  ;;  %s386_s1 = sshll.u32 %s379_s30, 4  ;;  %s2949_s1 = int_to_ptr.vmem [resolvable:$true] %s386_s1 }
  0x79   : > { %p3409_p2 = scmp.lt.s32.totalorder %s2622_s27, 4  ;;  %s3411_s7 = sld [smem:[#allocation38_spill]] }
  0x7a   : > { %s3412_s9 = sld [smem:[#allocation40_spill]]  ;;  %s376_s14 = scalar_lea.sflag [#allocation4], %s375_s4 }
  0x7b   : > { %p2945_p0 = pnand %p3409_p2, %p2896_p13 }
  0x7d   : > { %s2939_s18 = scalar_lea.hbm %s3408_s0, %s1945_s24  ;;  %p2404_p13 = pneg %p2945_p0 }
  0x7e   : > { %s2402_s30 = scalar_lea.hbm %s2939_s18, 128  ;;  %s2407_s26 = scalar_lea.hbm %s3408_s0, 256 }
  0x7f   : > { %s2955_s24 = scalar_lea.hbm %s3411_s7, %s2838_s19  ;;  %p2403_p10 = scmp.ne.s32.totalorder %s2939_s18, %s2402_s30 }
  0x80   : > { %s2961_s23 = scalar_lea.hbm %s3412_s9, %s2838_s19  ;;  %p2408_p6 = scmp.lt.u32.totalorder %s2939_s18, %s3408_s0 }
  0x81   : > { %p2405_p5 = pnand %p2404_p13, %p2403_p10  ;;  %p2409_p3 = scmp.lt.u32.totalorder %s2407_s26, %s2402_s30 }
  0x82   : > { %p2411_p12 = scmp.lt.u32.totalorder %s2402_s30, %s2939_s18 }
  0x83   : > { %p2406_p4 = pneg %p2405_p5  ;;  %p2410_p2 = por %p2409_p3, %p2408_p6 }
  0x85   : > { %p2412_p8 = por %p2411_p12, %p2410_p2 }
  0x87   : > { %p2413_p11 = pnand %p2412_p8, %p2406_p4 }
  0x89   : > { %2416 = shalt.err (!%p2413_p11)
}
  0x8a   : > { %s2417_s8 = scalar_lea.vmem %s2949_s1, 128  ;;  %s2628_s22 = smov [#allocation3]  }
  0x8b   : > { %p2418_p10 = scmp.ne.s32.totalorder %s2949_s1, %s2417_s8  ;;  %s2422_s19 = sshll.u32 %s2628_s22, 4  ;;  %s2423_s19 = int_to_ptr.vmem [resolvable:$false] %s2422_s19 }
  0x8c   : > { %s2424_s20 = scalar_lea.vmem %s2423_s19, 256  ;;  %p2425_p7 = scmp.lt.s32.totalorder %s2949_s1, %s2423_s19 }
  0x8d   : > { %p2420_p5 = pnand %p2418_p10, %p2404_p13  ;;  %p2426_p6 = scmp.lt.s32.totalorder %s2424_s20, %s2417_s8 }
  0x8f   : > { %p2421_p1 = pneg %p2420_p5  ;;  %p2427_p3 = por %p2426_p6, %p2425_p7 }
  0x91   : > { %p2428_p12 = pnand %p2427_p3, %p2421_p1 }
  0x93   : > { %2431 = shalt.err (!%p2428_p12)
}
  0x94   : > { %2185 = dma.hbm_to_vmem [thread:$0]  (!%p2945_p0), %s2939_s18, 128, %s2949_s1, %s376_s14  }
  0x95   : > { %s2432_s4 = scalar_lea.hbm %s2955_s24, 256  ;;  %s2437_s30 = scalar_lea.hbm %s3411_s7, 512 }
  0x96   : > { %p2433_p11 = scmp.ne.s32.totalorder %s2955_s24, %s2432_s4  ;;  %p2438_p7 = scmp.lt.u32.totalorder %s2955_s24, %s3411_s7 }
  0x97   : > { %p2439_p1 = scmp.lt.u32.totalorder %s2437_s30, %s2432_s4  ;;  %p2441_p2 = scmp.lt.u32.totalorder %s2432_s4, %s2955_s24 }
  0x98   : > { %p2435_p8 = pnand %p2433_p11, %p2804_p9 }
  0x99   : > { %p2440_p4 = por %p2439_p1, %p2438_p7 }
  0x9a   : > { %p2436_p13 = pneg %p2435_p8 }
  0x9b   : > { %p2442_p10 = por %p2441_p2, %p2440_p4 }
  0x9d   : > { %p2443_p5 = pnand %p2442_p10, %p2436_p13 }
  0x9f   : > { %2446 = shalt.err (!%p2443_p5)
}
  0xa0   : > { %s2447_s18 = scalar_lea.vmem %s2829_s11, 256  ;;  %s2629_s1 = smov [#allocation8]  }
  0xa1   : > { %p2448_p0 = scmp.ne.s32.totalorder %s2829_s11, %s2447_s18  ;;  %s2452_s25 = sshll.u32 %s2629_s1, 4  ;;  %s2453_s25 = int_to_ptr.vmem [resolvable:$false] %s2452_s25 }
  0xa2   : > { %s2454_s14 = scalar_lea.vmem %s2453_s25, 512  ;;  %p2455_p12 = scmp.lt.s32.totalorder %s2829_s11, %s2453_s25 }
  0xa3   : > { %p2450_p6 = pnand %p2448_p0, %p2804_p9  ;;  %p2456_p11 = scmp.lt.s32.totalorder %s2454_s14, %s2447_s18 }
  0xa5   : > { %p2451_p3 = pneg %p2450_p6  ;;  %p2457_p8 = por %p2456_p11, %p2455_p12 }
  0xa7   : > { %p2458_p7 = pnand %p2457_p8, %p2451_p3 }
  0xa9   : > { %2461 = shalt.err (!%p2458_p7)
}
  0xaa   : > { %p3413_p13 = scmp.ne.s32.totalorder %s3391_s12, 0  ;;  %s3414_s8 = smov 4  }
  0xab   : > { %s3415_s22 = smov 64   ;;  %s2462_s19 = scalar_lea.hbm %s2961_s23, 256 }
  0xac   : > { %2191 = dma.hbm_to_vmem [thread:$0]  (!%p3413_p13), %s2955_s24, 256, %s2829_s11, %s2798_s10, %s3415_s22, %s3415_s22, %s3414_s8  }
  0xad   : > { %p2463_p1 = scmp.ne.s32.totalorder %s2961_s23, %s2462_s19  ;;  %s2467_s17 = scalar_lea.hbm %s3412_s9, 512 }
  0xae   : > { %p2468_p10 = scmp.lt.u32.totalorder %s2961_s23, %s3412_s9  ;;  %p2469_p5 = scmp.lt.u32.totalorder %s2467_s17, %s2462_s19 }
  0xaf   : > { %p2465_p4 = pnand %p2463_p1, %p2804_p9  ;;  %p2471_p6 = scmp.lt.u32.totalorder %s2462_s19, %s2961_s23 }
  0xb0   : > { %p2470_p0 = por %p2469_p5, %p2468_p10 }
  0xb1   : > { %p2466_p2 = pneg %p2465_p4 }
  0xb2   : > { %p2472_p3 = por %p2471_p6, %p2470_p0 }
  0xb4   : > { %p2473_p12 = pnand %p2472_p3, %p2466_p2 }
  0xb6   : > { %2476 = shalt.err (!%p2473_p12)
}
  0xb7   : > { %s2477_s10 = scalar_lea.vmem %s2835_s5, 256  ;;  %s2630_s11 = smov [#allocation11]  }
  0xb8   : > { %p2478_p11 = scmp.ne.s32.totalorder %s2835_s5, %s2477_s10  ;;  %s2482_s24 = sshll.u32 %s2630_s11, 4  ;;  %s2483_s24 = int_to_ptr.vmem [resolvable:$false] %s2482_s24 }
  0xb9   : > { %s2484_s26 = scalar_lea.vmem %s2483_s24, 512  ;;  %p2485_p1 = scmp.lt.s32.totalorder %s2835_s5, %s2483_s24 }
  0xba   : > { %p2480_p8 = pnand %p2478_p11, %p2804_p9  ;;  %p2486_p4 = scmp.lt.s32.totalorder %s2484_s26, %s2477_s10 }
  0xbc   : > { %p2481_p7 = pneg %p2480_p8  ;;  %p2487_p10 = por %p2486_p4, %p2485_p1 }
  0xbe   : > { %p2488_p5 = pnand %p2487_p10, %p2481_p7 }
  0xc0   : > { %2491 = shalt.err (!%p2488_p5)
}
  0xc1   : > { %2197 = dma.hbm_to_vmem [thread:$0]  (!%p3413_p13), %s2961_s23, 256, %s2835_s5, %s2854_s13, %s3415_s22, %s3415_s22, %s3414_s8  }
  0xc2   : > { %p3416_p9 = scmp.ne.s32.totalorder %s3393_s3, 0 }
  0xc3   : > { %s3041_s16 = sand.u32 (!%p3416_p9), 1, %s2598_s21   ;;  %p3417_p2 = scmp.ne.s32.totalorder (!%p3416_p9), %s3400_s29, 0 }
  0xc4   : > { %523 = sbr.rel (%p3416_p9) target bundleno = 4493 (0x118d), region = 64  ;;  %s3366_s2 = sshll.u32 (!%p3416_p9), %s3041_s16, 3 }
  0xc5   : > { %s526_s18 = scalar_lea.sflag (!%p3416_p9), [#allocation4], %s3041_s16  ;;  %s3047_s12 = scalar_lea.vmem (!%p3416_p9), [#allocation3], %s3366_s2 }
  0xcb   : > { %2565 = dma.done.wait (%p3417_p2), %s526_s18, 128  }
  0xcc   : > { %2567 = vsyncadd (%p3417_p2), %s526_s18, 4294967168  ;;  %s3418_s3 = sld [smem:[#allocation17_spill]]  ;;  %s3419_s5 = sld [smem:[#allocation28_spill]] }
  0xcd   : > { %s534_s13 = sand.u32 1, %s2882_s6  }
  0xce   : > { %s535_s1 = scalar_lea.sflag [#allocation7], %s534_s13 }
  0xd2   : > { %s536_s23 = sand.u32 1, %s3418_s3   ;;  %p3420_p13 = scmp.ne.s32.totalorder %s3419_s5, 0 }
  0xd3   : > { %s3055_s25 = scalar_lea.vmem [#allocation6], %s536_s23 }
  0xd4   : > { %2569 = dma.done.wait (%p3420_p13), %s535_s1, 272  }
  0xd5   : > { %2571 = vsyncadd (%p3420_p13), %s535_s1, 4294967024  ;;  %s3061_s14 = sshll.u32 %s536_s23, 4  ;;  %s552_s8 = scalar_lea.sflag [#allocation10], %s534_s13 }
  0xd6   : > { %2573 = dma.done.wait (%p3420_p13), %s552_s8, 512  }
  0xd7   : > { %2575 = vsyncadd (%p3420_p13), %s552_s8, 4294966784  ;;  %s3421_s6 = sld [smem:[#allocation22_spill]]  ;;  %s3422_s19 = sld [smem:[#allocation21_spill]] }
  0xd8   : > { %s3423_s30 = sld [smem:[#allocation32_spill]]  ;;  %s3424_s18 = sld [smem:[#allocation33_spill]] }
  0xd9   : > { %s3425_s23 = sld [smem:[#allocation35_spill]]  ;;  %s3426_s29 = sld [smem:[#allocation36_spill]] }
  0xda   : > { %s3427_s17 = sld [smem:[#allocation37_spill]]  ;;  %s3428_s24 = sld [smem:[#allocation41_spill]] }
  0xdb   : > { %s3429_s9 = sshll.u32 %s3041_s16, 3 }
  0xdc   : > { %s3104_s5 = scalar_lea.vmem [#allocation12], %s3429_s9 }
  0xdd   : > { %p652_p0 = scmp.lt.s32.totalorder %s3421_s6, 1  ;;  %p657_p6 = scmp.lt.s32.totalorder %s3422_s19, 1 }
  0xde   : > { %p1974_p3 = scmp.ne.s32.totalorder %s3422_s19, 0 }
  0xdf   : > { %s3460_s6 = smov (!%p652_p0, %s3421_s6), 1  ;;  %v687_v0 = vld [vmem:[%s3047_s12] sm:$0xff] (!%p1974_p3)  ;;  %vm688_vm0 = vcmask (!%p1974_p3), 261120  }
  0xe0   : > { %s658_s20 = scalar_select %p657_p6, %s3422_s19, 1 }
  0xe1   : > { %s2017_s4 = sshll.u32 %s3460_s6, 4  ;;  %686 = sbr.rel (%p1974_p3) target bundleno = 232 (0xe8), region = 88  ;;  %689 = vst.msk [vmem:[#allocation2] sm:$0xff] (!%p1974_p3), %vm688_vm0, %v687_v0 }
  0xe2   : > { %s3076_s10 = scalar_lea.vmem %s3423_s30, %s2017_s4  ;;  %s2018_s11 = sshll.u32 %s658_s20, 4 }
  0xe3   : > { %s3081_s3 = scalar_lea.vmem %s3424_s18, %s2018_s11  ;;  %s666_s1 = scalar_lea.vmem %s3425_s23, %s2018_s11 }
  0xe4   : > { %s3089_s2 = scalar_lea.vmem %s3426_s29, %s2018_s11  ;;  %s3094_s4 = scalar_lea.vmem %s3427_s17, %s2018_s11 }
  0xe5   : > { %s2022_s15 = sshll.u32 %s658_s20, 5  ;;  %s564_s18 = scalar_lea.vmem [#allocation11], %s3061_s14 }
  0xe6   : > { %s3099_s26 = scalar_lea.vmem %s3428_s24, %s2022_s15 }
  0xe8 PF: > { %v3108_v1 = vld [vmem:[#allocation2] sm:$0xff]  ;;  %vm696_vm1 = vcmask 261120   ;;  %v2631_v9 = vmov 0.0   ;;  %vm2632_vm2 = vmmov 0   ;;  %v2303_v10 = vld [vmem:[%s666_s1 + $0x8] sm:$0xff]   ;;  %v711_v13 = vlaneseq  ;;  %s2633_s0 = smov 112  }
  0xe9   : > { %v697_v2 = vsel %vm696_vm1, %v3108_v1, 0.0  ;;  %v2302_v8 = vld [vmem:[%s666_s1] sm:$0xff]   ;;  %2062 = vmatprep.subr.bf16.mxu1 %v2631_v9  ;;  %2066 = vmatprep.mubr.msk.bf16.mxu1 %vm2632_vm2, %v2631_v9  ;;  %s2634_s7 = smov 96   ;;  %s2635_s9 = smov 80   ;;  %vm789_vm3 = vcmask 130048   ;;  %vm836_vm4 = vcmask 64512  }
  0xea   : > { %698 = vadd.xlane.f32.xlu0 %v697_v2  ;;  %2063 = vmatpush3.bf16.msra.mxu1 %v2302_v8  ;;  %v3122_v15 = vshrl.u32 %v711_v13, 7  ;;  %v3126_v17 = vld [vmem:[%s3081_s3] sm:$0xff]  ;;  %s2636_s12 = smov 48   ;;  %s2637_s29 = smov 64   ;;  %vm854_vm5 = vcmask 1043456   ;;  %vm1635_vm6 = vcmask 523264  }
  0xeb   : > { %2076 = vmatprep.subr.bf16.mxu0 %v2631_v9  ;;  %2064 = vmatprep.subr.bf16.mxu1 %v2631_v9  ;;  %s2638_s22 = smov 16   ;;  %s3432_s20 = scalar_lea.vmem [#allocation9], %s3061_s14 }
  0xec   : > { %2078 = vmatprep.mubr.msk.bf16.mxu0 %vm2632_vm2, %v2631_v9  ;;  %v713_v16 = vsub.s32 0, %v3122_v15  ;;  %v718_v18 = vsub.s32 1, %v3122_v15 }
  0xee   : > { %2065 = vmatpush3.bf16.msra.mxu1 %v2303_v10  ;;  %v714_v19 = vrot.slane %v3126_v17, %v713_v16  ;;  %v719_v22 = vrot.slane %v3126_v17, %v718_v18 }
  0xef   : > { %2070 = vmatprep.subr.bf16.mxu1 %v2631_v9 }
 0x177   : > { %v699_v3 = vpop.xlane.xlu0 %698 }
 0x178   : > { %v701_v4 = vmul.f32 0.03125, %v699_v3 }
 0x17a   : > { %v702_v5 = vsub.f32 %v3108_v1, %v701_v4 }
 0x17c   : > { %v703_v6 = vmul.f32 %v702_v5, %v702_v5 }
 0x17e   : > { %v704_v7 = vsel %vm696_vm1, %v703_v6, 0.0  ;;  %v2305_v6 = vld [vmem:[%s3089_s2 + $0x8] sm:$0xff]  }
 0x17f   : > { %705 = vadd.xlane.f32.xlu0 %v704_v7 }
 0x20c   : > { %v706_v11 = vpop.xlane.xlu0 %705 }
 0x20d   : > { %v707_v12 = vmul.f32 0.03125, %v706_v11 }
 0x20f   : > { %v708_v14 = vadd.f32 1e-05, %v707_v12 }
 0x211   : > { %2318 = vrsqrt.f32 %v708_v14 }
 0x21b   : > { %v2319_v20 = vpop.eup %2318 }
 0x21c   : > { %v710_v21 = vmul.f32 %v2319_v20, %v702_v5  ;;  %v2304_v5 = vld [vmem:[%s3089_s2] sm:$0xff]   ;;  %s3430_s2 = scalar_lea.vmem [#allocation8], %s3061_s14 }
 0x21d   : > { %s3431_s19 = smov %s3430_s2 }
 0x21e   : > { %v715_v23 = vmul.f32 %v714_v19, %v710_v21  ;;  %v1016_v21 = vsub.s32 2, %v3122_v15 }
 0x220   : > { %v720_v24 = vadd.f32 %v719_v22, %v715_v23  ;;  %v1017_v22 = vrot.slane %v3126_v17, %v1016_v21 }
 0x222   : > { %v721_v25 = vpack.c.bf16 %v720_v24, %v720_v24 }
 0x224   : > { %2067 = vmatmul.mubr.msk.bf16.vlgmr.msra.gmra.mrb[0].mxu1 %vm696_vm1, %v721_v25 }
 0x225   : > { %2072 = vmatprep.mubr.msk.bf16.mxu1 %vm2632_vm2, %v2631_v9 }
 0x2f7   : > { %v775_v26 = vpop.f32.mrb[0].mxu1 }
 0x2f8   : > { %v785_v27 = vpack.c.bf16 %v775_v26, %v775_v26  ;;  %v2068_v28 = vpop.f32.mrb[1].mxu1 }
 0x2f9   : > { %v778_v29 = vpop.f32.mrb[2].mxu1 }
 0x2fa   : > { %898 = vrot.lane.b32.xlu0 %v785_v27, %s2633_s0  ;;  %787 = vrot.lane.b32.xlu1 %v785_v27, %s2634_s7  ;;  %v2069_v30 = vpop.f32.mrb[3].mxu1 }
 0x2fe   : > { %900 = vrot.lane.b32.xlu1 %v785_v27, %s2635_s9 }
 0x36c   : > { %v788_v31 = vpop.permute.xlu1 %787  ;;  %v899_v35 = vpop.permute.xlu0 %898 }
 0x36d   : > { %v794_v32 = vsel %vm789_vm3, %v788_v31, 0 }
 0x36e   : > { %2071 = vmatpush3.bf16.xpose.msra.mxu1 %v794_v32 }
 0x36f   : > { %2082 = vmatprep.subr.bf16.mxu1 %v2631_v9 }
 0x370   : > { %v901_v33 = vpop.permute.xlu1 %900 }
 0x371   : > { %v906_v34 = vsel %vm789_vm3, %v901_v33, 0 }
 0x375   : > { %2073 = vmatmul.mubr.msk.bf16.vlgmr.msra.gmra.mrb[4].mxu1 %vm789_vm3, %v785_v27 }
 0x376   : > { %2083 = vmatpush3.bf16.xpose.msra.mxu1 %v906_v34  ;;  %2084 = vmatprep.mubr.msk.bf16.mxu1 %vm2632_vm2, %v2631_v9 }
 0x377   : > { %2094 = vmatprep.subr.bf16.mxu1 %v2631_v9 }
 0x37d   : > { %2085 = vmatmul.mubr.msk.bf16.vlgmr.msra.gmra.mrb[8].mxu1 %vm789_vm3, %v899_v35  ;;  %v2306_v35 = vld [vmem:[%s3430_s2] sm:$0xff]  }
 0x37e   : > { %2098 = vmatprep.mubr.msk.bf16.mxu1 %vm2632_vm2, %v2631_v9  ;;  %2095 = vmatpush3.bf16.msra.mxu1 %v2304_v5 }
 0x37f   : > { %2096 = vmatprep.subr.bf16.mxu1 %v2631_v9 }
 0x382   : > { %2097 = vmatpush3.bf16.msra.mxu1 %v2305_v6 }
 0x383   : > { %2110 = vmatprep.subr.bf16.mxu1 %v2631_v9 }
 0x448   : > { %v830_v36 = vpop.f32.mrb[4].mxu1 }
 0x449   : > { %v2074_v37 = vpop.f32.mrb[5].mxu1  ;;  %v837_v38 = vsel %vm836_vm4, %v830_v36, -inf }
 0x44a   : > { %838 = vmax.xlane.f32.xlu1 %v837_v38  ;;  %v833_v39 = vpop.f32.mrb[6].mxu1  ;;  %v692_v37 = vld [vmem:[%s3076_s10 + $0x8] sm:$0xff] }
 0x44b   : > { %v2075_v40 = vpop.f32.mrb[7].mxu1  ;;  %v2308_v39 = vld [vmem:[%s3094_s4] sm:$0xff]  }
 0x44c   : > { %v2309_v40 = vld [vmem:[%s3094_s4 + $0x8] sm:$0xff]  }
 0x450   : > { %v942_v41 = vpop.f32.mrb[8].mxu1 }
 0x451   : > { %v2086_v42 = vpop.f32.mrb[9].mxu1  ;;  %v948_v43 = vsel %vm836_vm4, %v942_v41, -inf }
 0x452   : > { %949 = vmax.xlane.f32.xlu0 %v948_v43  ;;  %v945_v44 = vpop.f32.mrb[10].mxu1 }
 0x453   : > { %v2087_v45 = vpop.f32.mrb[11].mxu1  ;;  %v1089_v44 = vsub.s32 3, %v3122_v15 }
 0x454   : > { %v1094_v45 = vsub.s32 4, %v3122_v15 }
 0x468   : > { %960 = vrot.lane.b32.xlu0 %v785_v27, %s2636_s12 }
 0x4d7   : > { %v839_v46 = vpop.xlane.xlu1 %838 }
 0x4d8   : > { %v840_v47 = vsub.f32 %v830_v36, %v839_v46  ;;  %v691_v36 = vld [vmem:[%s3076_s10] sm:$0xff]  ;;  %v1090_v46 = vrot.slane %v3126_v17, %v1089_v44  ;;  %s3433_s10 = smov %s3432_s20 }
 0x4d9   : > { %v1157_v38 = vpack.c.bf16 %v692_v37, %v691_v36  ;;  %v2310_v37 = vld [vmem:[%s3432_s20] sm:$0xff]  }
 0x4da   : > { %v841_v48 = vmul.f32 1.442695, %v840_v47 }
 0x4dc   : > { %2320 = vpow2.f32 %v841_v48 }
 0x4df   : > { %v950_v49 = vpop.xlane.xlu0 %949 }
 0x4e0   : > { %v951_v50 = vsub.f32 %v942_v41, %v950_v49  ;;  %v1095_v49 = vrot.slane %v3126_v17, %v1094_v45 }
 0x4e2   : > { %v952_v51 = vmul.f32 1.442695, %v951_v50 }
 0x4e3   : > { %v961_v62 = vpop.permute.xlu0 %960 }
 0x4e4   : > { %2322 = vpow2.f32 %v952_v51  ;;  %v966_v0 = vsel %vm854_vm5, %v961_v62, 0 }
 0x4e6   : > { %v2321_v52 = vpop.eup %2320 }
 0x4e7   : > { %v843_v53 = vsel %vm836_vm4, %v2321_v52, 0.0 }
 0x4e8   : > { %844 = vadd.xlane.f32.xlu1 %v843_v53 }
 0x4ee   : > { %v2323_v54 = vpop.eup %2322 }
 0x4ef   : > { %v954_v55 = vsel %vm836_vm4, %v2323_v54, 0.0 }
 0x4f0   : > { %955 = vadd.xlane.f32.xlu1 %v954_v55 }
 0x501   : > { %849 = vrot.lane.b32.xlu1 %v785_v27, %s2637_s29 }
 0x575   : > { %v845_v56 = vpop.xlane.xlu1 %844 }
 0x576   : > { %2324 = vrcp.f32 %v845_v56 }
 0x57d   : > { %v956_v57 = vpop.xlane.xlu1 %955 }
 0x57e   : > { %2326 = vrcp.f32 %v956_v57 }
 0x580   : > { %v2325_v58 = vpop.eup %2324 }
 0x581   : > { %v850_v59 = vpop.permute.xlu1 %849  ;;  %v847_v60 = vmul.f32 %v2325_v58, %v2321_v52 }
 0x582   : > { %v856_v61 = vsel %vm854_vm5, %v850_v59, 0 }
 0x583   : > { %2077 = vmatpush3.bf16.msra.mxu0 %v856_v61  ;;  %v848_v63 = vpack.c.bf16 %v847_v60, %v847_v60 }
 0x584   : > { %2088 = vmatprep.subr.bf16.mxu0 %v2631_v9 }
 0x586   : > { %2079 = vmatmul.mubr.msk.bf16.vlgmr.msra.gmra.mrb[0].mxu0 %vm836_vm4, %v848_v63 }
 0x587   : > { %2089 = vmatpush3.bf16.msra.mxu0 %v966_v0  ;;  %2090 = vmatprep.mubr.msk.bf16.mxu0 %vm2632_vm2, %v2631_v9 }
 0x588   : > { %v2327_v2 = vpop.eup %2326  ;;  %2102 = vmatprep.subr.bf16.mxu0 %v2631_v9 }
 0x589   : > { %v958_v3 = vmul.f32 %v2327_v2, %v2323_v54 }
 0x58b   : > { %v959_v4 = vpack.c.bf16 %v958_v3, %v958_v3 }
 0x58e   : > { %2091 = vmatmul.mubr.msk.bf16.vlgmr.msra.gmra.mrb[4].mxu0 %vm836_vm4, %v959_v4 }
 0x58f   : > { %2106 = vmatprep.mubr.msk.bf16.mxu0 %vm2632_vm2, %v2631_v9  ;;  %2103 = vmatpush3.bf16.msra.mxu0 %v2308_v39 }
 0x590   : > { %2104 = vmatprep.subr.bf16.mxu0 %v2631_v9 }
 0x593   : > { %2105 = vmatpush3.bf16.msra.mxu0 %v2309_v40 }
 0x594   : > { %2118 = vmatprep.subr.bf16.mxu0 %v2631_v9 }
 0x659   : > { %v892_v7 = vpop.f32.mrb[0].mxu0 }
 0x65a   : > { %v2080_v8 = vpop.f32.mrb[1].mxu0 }
 0x65b   : > { %v895_v10 = vpop.f32.mrb[2].mxu0 }
 0x65c   : > { %v2081_v11 = vpop.f32.mrb[3].mxu0 }
 0x661   : > { %v1002_v12 = vpop.f32.mrb[4].mxu0 }
 0x662   : > { %1009 = vrot.lane.b32.xlu1 %v1002_v12, %s2638_s22  ;;  %v2092_v13 = vpop.f32.mrb[5].mxu0 }
 0x663   : > { %v1005_v14 = vpop.f32.mrb[6].mxu0 }
 0x664   : > { %v2093_v16 = vpop.f32.mrb[7].mxu0 }
 0x6d4   : > { %v1010_v18 = vpop.permute.xlu1 %1009 }
 0x6d5   : > { %v1012_v19 = vsel %vm789_vm3, %v892_v7, %v1010_v18 }
 0x6d6   : > { %v1013_v20 = vpack.c.bf16 %v1012_v19, %v1012_v19 }
 0x6d8   : > { %2099 = vmatmul.mubr.msk.bf16.vlgmr.msra.gmra.mrb[12].mxu1 %vm696_vm1, %v1013_v20 }
 0x6d9   : > { %2114 = vmatprep.mubr.msk.bf16.mxu1 %vm2632_vm2, %v2631_v9  ;;  %2111 = vmatpush3.bf16.msra.mxu1 %v2306_v35 }
 0x6da   : > { %2112 = vmatprep.subr.bf16.mxu1 %v2631_v9 }
 0x7ab   : > { %v1067_v23 = vpop.f32.mrb[12].mxu1 }
 0x7ac   : > { %v1068_v24 = vadd.f32 %v1067_v23, %v1017_v22  ;;  %v2100_v25 = vpop.f32.mrb[13].mxu1 }
 0x7ad   : > { %v1070_v26 = vpop.f32.mrb[14].mxu1 }
 0x7ae   : > { %v3171_v27 = vadd.f32 %v1068_v24, %v3108_v1  ;;  %v2101_v28 = vpop.f32.mrb[15].mxu1  ;;  %v2307_v1 = vld [vmem:[%s3431_s19 + $0x8] sm:$0xff]  }
 0x7af   : > { %2113 = vmatpush3.bf16.msra.mxu1 %v2307_v1 }
 0x7b0   : > { %v1074_v29 = vsel %vm696_vm1, %v3171_v27, 0.0  ;;  %2124 = vmatprep.subr.bf16.mxu1 %v2631_v9 }
 0x7b1   : > { %1075 = vadd.xlane.f32.xlu1 %v1074_v29 }
 0x7b2   : > { %2115 = vmatmul.mubr.msk.bf16.vlgmr.msra.gmra.mrb[16].mxu1 %vm696_vm1, %v1157_v38 }
 0x7b3   : > { %2126 = vmatprep.mubr.msk.bf16.mxu1 %vm2632_vm2, %v2631_v9 }
 0x83e   : > { %v1076_v30 = vpop.xlane.xlu1 %1075 }
 0x83f   : > { %v1077_v31 = vmul.f32 0.03125, %v1076_v30 }
 0x841   : > { %v1078_v32 = vsub.f32 %v3171_v27, %v1077_v31 }
 0x843   : > { %v1079_v33 = vmul.f32 %v1078_v32, %v1078_v32 }
 0x845   : > { %v1080_v34 = vsel %vm696_vm1, %v1079_v33, 0.0 }
 0x846   : > { %1081 = vadd.xlane.f32.xlu0 %v1080_v34 }
 0x885   : > { %v1211_v53 = vpop.f32.mrb[16].mxu1 }
 0x886   : > { %v2116_v54 = vpop.f32.mrb[17].mxu1 }
 0x887   : > { %v1214_v55 = vpop.f32.mrb[18].mxu1 }
 0x888   : > { %v1223_v56 = vpack.c.bf16 %v1214_v55, %v1211_v53  ;;  %v2117_v57 = vpop.f32.mrb[19].mxu1 }
 0x88a   : > { %1332 = vrot.lane.b32.xlu1 %v1223_v56, %s2633_s0  ;;  %v1228_v58 = vsel %vm789_vm3, %v1223_v56, 0 }
 0x8d3   : > { %v1082_v41 = vpop.xlane.xlu0 %1081 }
 0x8d4   : > { %v1083_v42 = vmul.f32 0.03125, %v1082_v41 }
 0x8d6   : > { %v1084_v43 = vadd.f32 1e-05, %v1083_v42  ;;  %v2311_v42 = vld [vmem:[%s3433_s10 + $0x8] sm:$0xff]  }
 0x8d8   : > { %2328 = vrsqrt.f32 %v1084_v43 }
 0x8e2   : > { %v2329_v47 = vpop.eup %2328 }
 0x8e3   : > { %v1086_v48 = vmul.f32 %v2329_v47, %v1078_v32 }
 0x8e5   : > { %v1091_v50 = vmul.f32 %v1090_v46, %v1086_v48 }
 0x8e7   : > { %v1096_v51 = vadd.f32 %v1095_v49, %v1091_v50  ;;  %v1446_v50 = vsub.s32 5, %v3122_v15 }
 0x8e9   : > { %v1097_v52 = vpack.c.bf16 %v1096_v51, %v1096_v51  ;;  %v1447_v51 = vrot.slane %v3126_v17, %v1446_v50 }
 0x8eb   : > { %2107 = vmatmul.mubr.msk.bf16.vlgmr.msra.gmra.mrb[8].mxu0 %vm696_vm1, %v1097_v52 }
 0x8ec   : > { %2120 = vmatprep.mubr.msk.bf16.mxu0 %vm2632_vm2, %v2631_v9  ;;  %2119 = vmatpush3.bf16.xpose.msra.mxu0 %v1228_v58 }
 0x8ed   : > { %2130 = vmatprep.subr.bf16.mxu0 %v2631_v9 }
 0x8fc   : > { %v1333_v59 = vpop.permute.xlu1 %1332 }
 0x8fd   : > { %v1338_v63 = vsel %vm789_vm3, %v1333_v59, 0 }
 0x9be   : > { %v1151_v60 = vpop.f32.mrb[8].mxu0 }
 0x9bf   : > { %v1222_v61 = vpack.c.bf16 %v1151_v60, %v1151_v60  ;;  %v2108_v62 = vpop.f32.mrb[9].mxu0 }
 0x9c0   : > { %v1154_v0 = vpop.f32.mrb[10].mxu0 }
 0x9c1   : > { %1330 = vrot.lane.b32.xlu0 %v1222_v61, %s2633_s0  ;;  %v2109_v2 = vpop.f32.mrb[11].mxu0  ;;  %2121 = vmatmul.mubr.msk.bf16.vlgmr.msra.gmra.mrb[12].mxu0 %vm789_vm3, %v1222_v61  ;;  %v2312_v0 = vld [vmem:[%s564_s18] sm:$0xff]  }
 0x9c2   : > { %2131 = vmatpush3.bf16.xpose.msra.mxu0 %v1338_v63  ;;  %2132 = vmatprep.mubr.msk.bf16.mxu0 %vm2632_vm2, %v2631_v9  ;;  %v2313_v2 = vld [vmem:[%s564_s18 + $0x8] sm:$0xff]  }
 0x9c3   : > { %2142 = vmatprep.subr.bf16.mxu0 %v2631_v9 }
 0xa33   : > { %v1331_v3 = vpop.permute.xlu0 %1330 }
 0xa34   : > { %2133 = vmatmul.mubr.msk.bf16.vlgmr.msra.gmra.mrb[16].mxu0 %vm789_vm3, %v1331_v3 }
 0xa35   : > { %2146 = vmatprep.mubr.msk.bf16.mxu0 %vm2632_vm2, %v2631_v9  ;;  %2143 = vmatpush3.bf16.msra.mxu0 %v2310_v37 }
 0xa36   : > { %2144 = vmatprep.subr.bf16.mxu0 %v2631_v9 }
 0xa39   : > { %2145 = vmatpush3.bf16.msra.mxu0 %v2311_v42 }
 0xa3a   : > { %2158 = vmatprep.subr.bf16.mxu0 %v2631_v9 }
 0xa94   : > { %v1264_v4 = vpop.f32.mrb[12].mxu0 }
 0xa95   : > { %v2122_v5 = vpop.f32.mrb[13].mxu0  ;;  %v1270_v6 = vsel %vm789_vm3, %v1264_v4, -inf }
 0xa96   : > { %1271 = vmax.xlane.f32.xlu1 %v1270_v6  ;;  %v1267_v7 = vpop.f32.mrb[14].mxu0  ;;  %v1519_v5 = vsub.s32 6, %v3122_v15  ;;  %v1524_v6 = vsub.s32 7, %v3122_v15  ;;  %v2316_v15 = vld [vmem:[%s3099_s26 + $0x10] sm:$0xff]  }
 0xa97   : > { %v2123_v8 = vpop.f32.mrb[15].mxu0 }
 0xa98   : > { %v1520_v7 = vrot.slane %v3126_v17, %v1519_v5 }
 0xb07   : > { %v1374_v10 = vpop.f32.mrb[16].mxu0 }
 0xb08   : > { %v2134_v11 = vpop.f32.mrb[17].mxu0  ;;  %v1380_v12 = vsel %vm789_vm3, %v1374_v10, -inf }
 0xb09   : > { %1381 = vmax.xlane.f32.xlu0 %v1380_v12  ;;  %v1377_v13 = vpop.f32.mrb[18].mxu0  ;;  %v1525_v11 = vrot.slane %v3126_v17, %v1524_v6  ;;  %v1998_v17 = vld [vmem:[%s3055_s25] ss:$0 sm:$0xff]  ;;  %s3434_s25 = sld [smem:[#allocation21_spill]] }
 0xb0a   : > { %v2135_v14 = vpop.f32.mrb[19].mxu0 }
 0xb0f   : > { %p2008_p12 = scmp.eq.s32.totalorder %s3434_s25, 1 }
 0xb1f   : > { %1283 = vrot.lane.b32.xlu0 %v1223_v56, %s2634_s7 }
 0xb23   : > { %v1272_v16 = vpop.xlane.xlu1 %1271 }
 0xb24   : > { %v1273_v18 = vsub.f32 %v1264_v4, %v1272_v16  ;;  %v2314_v16 = vld [vmem:[%s3099_s26] sm:$0xff]  }
 0xb26   : > { %v1274_v19 = vmul.f32 1.442695, %v1273_v18  ;;  %v2315_v18 = vld [vmem:[%s3099_s26 + $0x8] sm:$0xff]  }
 0xb28   : > { %2330 = vpow2.f32 %v1274_v19  ;;  %v2317_v19 = vld [vmem:[%s3099_s26 + $0x18] sm:$0xff]  }
 0xb32   : > { %v2331_v20 = vpop.eup %2330 }
 0xb33   : > { %v1276_v21 = vsel %vm789_vm3, %v2331_v20, 0.0 }
 0xb34   : > { %1277 = vadd.xlane.f32.xlu1 %v1276_v21 }
 0xb96   : > { %v1382_v22 = vpop.xlane.xlu0 %1381 }
 0xb97   : > { %v1383_v23 = vsub.f32 %v1374_v10, %v1382_v22 }
 0xb99   : > { %v1384_v24 = vmul.f32 1.442695, %v1383_v23 }
 0xb9a   : > { %v1284_v25 = vpop.permute.xlu0 %1283 }
 0xb9b   : > { %2332 = vpow2.f32 %v1384_v24  ;;  %2125 = vmatpush3.bf16.msra.mxu1 %v1284_v25 }
 0xb9c   : > { %2136 = vmatprep.subr.bf16.mxu1 %v2631_v9 }
 0xba5   : > { %v2333_v26 = vpop.eup %2332 }
 0xba6   : > { %v1386_v28 = vsel %vm789_vm3, %v2333_v26, 0.0 }
 0xba7   : > { %1387 = vadd.xlane.f32.xlu1 %v1386_v28 }
 0xbb8   : > { %1392 = vrot.lane.b32.xlu1 %v1223_v56, %s2635_s9 }
 0xbc1   : > { %v1278_v29 = vpop.xlane.xlu1 %1277 }
 0xbc2   : > { %2334 = vrcp.f32 %v1278_v29 }
 0xbcc   : > { %v2335_v30 = vpop.eup %2334 }
 0xbcd   : > { %v1280_v31 = vmul.f32 %v2335_v30, %v2331_v20 }
 0xbcf   : > { %v1281_v32 = vpack.c.bf16 %v1280_v31, %v1280_v31 }
 0xbd1   : > { %2127 = vmatmul.mubr.msk.bf16.vlgmr.msra.gmra.mrb[20].mxu1 %vm789_vm3, %v1281_v32  ;;  %v2002_v32 = vld [vmem:[%s3081_s3 + $0x8] ss:$0 sm:$0xff] }
 0xbd2   : > { %2138 = vmatprep.mubr.msk.bf16.mxu1 %vm2632_vm2, %v2631_v9 }
 0xc34   : > { %v1388_v33 = vpop.xlane.xlu1 %1387 }
 0xc35   : > { %2336 = vrcp.f32 %v1388_v33 }
 0xc38   : > { %v1393_v34 = vpop.permute.xlu1 %1392 }
 0xc39   : > { %2137 = vmatpush3.bf16.msra.mxu1 %v1393_v34 }
 0xc3a   : > { %2150 = vmatprep.subr.bf16.mxu1 %v2631_v9 }
 0xc3f   : > { %v2337_v35 = vpop.eup %2336 }
 0xc40   : > { %v1390_v1 = vmul.f32 %v2337_v35, %v2333_v26 }
 0xc42   : > { %v1391_v36 = vpack.c.bf16 %v1390_v1, %v1390_v1 }
 0xc44   : > { %2139 = vmatmul.mubr.msk.bf16.vlgmr.msra.gmra.mrb[24].mxu1 %vm789_vm3, %v1391_v36 }
 0xc45   : > { %2154 = vmatprep.mubr.msk.bf16.mxu1 %vm2632_vm2, %v2631_v9  ;;  %2151 = vmatpush3.bf16.msra.mxu1 %v2312_v0 }
 0xc46   : > { %2152 = vmatprep.subr.bf16.mxu1 %v2631_v9 }
 0xc49   : > { %2153 = vmatpush3.bf16.msra.mxu1 %v2313_v2 }
 0xca4   : > { %v1323_v38 = vpop.f32.mrb[20].mxu1 }
 0xca5   : > { %v2128_v39 = vpop.f32.mrb[21].mxu1 }
 0xca6   : > { %v1326_v40 = vpop.f32.mrb[22].mxu1 }
 0xca7   : > { %v2129_v41 = vpop.f32.mrb[23].mxu1 }
 0xd17   : > { %v1432_v43 = vpop.f32.mrb[24].mxu1 }
 0xd18   : > { %1439 = vrot.lane.b32.xlu1 %v1432_v43, %s2638_s22  ;;  %v2140_v44 = vpop.f32.mrb[25].mxu1 }
 0xd19   : > { %v1435_v45 = vpop.f32.mrb[26].mxu1 }
 0xd1a   : > { %v2141_v46 = vpop.f32.mrb[27].mxu1 }
 0xd8a   : > { %v1440_v47 = vpop.permute.xlu1 %1439 }
 0xd8b   : > { %v1442_v48 = vsel %vm789_vm3, %v1323_v38, %v1440_v47 }
 0xd8c   : > { %v1443_v49 = vpack.c.bf16 %v1442_v48, %v1442_v48 }
 0xd8e   : > { %2147 = vmatmul.mubr.msk.bf16.vlgmr.msra.gmra.mrb[20].mxu0 %vm696_vm1, %v1443_v49 }
 0xd8f   : > { %2166 = vmatprep.mubr.msk.bf16.mxu0 %vm2632_vm2, %v2631_v9  ;;  %2159 = vmatpush3.bf16.msra.mxu0 %v2314_v16 }
 0xd90   : > { %2160 = vmatprep.subr.bf16.mxu0 %v2631_v9 }
 0xd93   : > { %2161 = vmatpush3.bf16.msra.mxu0 %v2315_v18 }
 0xd94   : > { %2162 = vmatprep.subr.bf16.mxu0 %v2631_v9 }
 0xd97   : > { %2163 = vmatpush3.bf16.msra.mxu0 %v2316_v15 }
 0xd98   : > { %2164 = vmatprep.subr.bf16.mxu0 %v2631_v9 }
 0xd9b   : > { %2165 = vmatpush3.bf16.msra.mxu0 %v2317_v19 }
 0xe61   : > { %v1497_v52 = vpop.f32.mrb[20].mxu0 }
 0xe62   : > { %v1498_v53 = vadd.f32 %v1497_v52, %v1447_v51  ;;  %v2148_v54 = vpop.f32.mrb[21].mxu0 }
 0xe63   : > { %v1500_v55 = vpop.f32.mrb[22].mxu0 }
 0xe64   : > { %v1503_v56 = vadd.f32 %v1498_v53, %v3171_v27  ;;  %v2149_v57 = vpop.f32.mrb[23].mxu0 }
 0xe66   : > { %v1504_v58 = vsel %vm696_vm1, %v1503_v56, 0.0 }
 0xe67   : > { %1505 = vadd.xlane.f32.xlu0 %v1504_v58 }
 0xef4   : > { %v1506_v59 = vpop.xlane.xlu0 %1505 }
 0xef5   : > { %v1507_v60 = vmul.f32 0.03125, %v1506_v59 }
 0xef7   : > { %v1508_v61 = vsub.f32 %v1503_v56, %v1507_v60 }
 0xef9   : > { %v1509_v62 = vmul.f32 %v1508_v61, %v1508_v61 }
 0xefb   : > { %v1510_v63 = vsel %vm696_vm1, %v1509_v62, 0.0 }
 0xefc   : > { %1511 = vadd.xlane.f32.xlu1 %v1510_v63 }
 0xf89   : > { %v1512_v27 = vpop.xlane.xlu1 %1511 }
 0xf8a   : > { %v1513_v3 = vmul.f32 0.03125, %v1512_v27 }
 0xf8c   : > { %v1514_v4 = vadd.f32 1e-05, %v1513_v3 }
 0xf8e   : > { %2338 = vrsqrt.f32 %v1514_v4 }
 0xf98   : > { %v2339_v8 = vpop.eup %2338 }
 0xf99   : > { %v1516_v10 = vmul.f32 %v2339_v8, %v1508_v61 }
 0xf9b   : > { %v1521_v12 = vmul.f32 %v1520_v7, %v1516_v10 }
 0xf9d   : > { %v1526_v13 = vadd.f32 %v1525_v11, %v1521_v12 }
 0xf9f   : > { %v1527_v14 = vpack.c.bf16 %v1526_v13, %v1526_v13 }
 0xfa1   : > { %2155 = vmatmul.mubr.msk.bf16.vlgmr.msra.gmra.mrb[28].mxu1 %vm696_vm1, %v1527_v14 }
0x1074   : > { %v1587_v20 = vpop.f32.mrb[28].mxu1 }
0x1075   : > { %v1588_v21 = vadd.f32 %v1998_v17, %v1587_v20  ;;  %v2156_v22 = vpop.f32.mrb[29].mxu1 }
0x1076   : > { %v1590_v23 = vpop.f32.mrb[30].mxu1 }
0x1077   : > { %v1594_v24 = vmul.f32 0.70710677, %v1588_v21  ;;  %v2157_v25 = vpop.f32.mrb[31].mxu1  ;;  %v1593_v28 = vmul.f32 0.5, %v1588_v21 }
0x1079   : > { %2340 = verf.f32 %v1594_v24 }
0x1083   : > { %v2341_v26 = vpop.eup %2340 }
0x1084   : > { %v1596_v29 = vadd.f32 1.0, %v2341_v26 }
0x1086   : > { %v1597_v30 = vmul.f32 %v1596_v29, %v1593_v28 }
0x1088   : > { %v1598_v31 = vpack.c.bf16 %v1597_v30, %v1597_v30 }
0x108a   : > { %2167 = vmatmul.mubr.msk.bf16.vlgmr.msra.gmra.mrb[24].mxu0 %vm1635_vm6, %v1598_v31 }
0x115a   : > { %1683 = sbr.rel (%p2008_p12) target bundleno = 4451 (0x1163), region = 92 }
0x115d   : > { %v1673_v9 = vpop.f32.mrb[24].mxu0 }
0x115e   : > { %v1674_v33 = vadd.f32 %v2002_v32, %v1673_v9  ;;  %v2168_v34 = vpop.f32.mrb[25].mxu0 }
0x115f   : > { %v1676_v35 = vpop.f32.mrb[26].mxu0 }
0x1160   : > { %v1679_v1 = vadd.f32 %v1674_v33, %v1503_v56  ;;  %v2169_v36 = vpop.f32.mrb[27].mxu0 }
0x1162   : > { %1684 = vst.msk [vmem:[#allocation2] sm:$0xff] %vm696_vm1, %v1679_v1 }
0x1163 PF: > { %s3435_s14 = sld [smem:[#allocation21_spill]] }
0x1169   : > { %p2009_p11 = scmp.ne.s32.totalorder %s3435_s14, 1 }
0x116a   : > { %1689 = vst.msk [vmem:[%s3104_s5] sm:$0xff] (!%p2009_p11), %vm696_vm1, %v1679_v1 }
0x116b   : > { %1688 = sbr.rel (%p2009_p11) target bundleno = 4466 (0x1172), region = 96 }
0x1172 PF: > { %s3436_s11 = sld [smem:[#allocation22_spill]]  ;;  %s3437_s1 = sld [smem:[#allocation42_spill]] }
0x1173   : > { %s1704_s6 = sshll.u32 %s3104_s5, 4  ;;  %s1691_s17 = scalar_lea.sflag [#allocation5], %s3041_s16  ;;  %s1705_s6 = int_to_ptr.vmem [resolvable:$true] %s1704_s6 }
0x1174   : > { %s2492_s4 = scalar_lea.vmem %s1705_s6, 128  ;;  %p3438_p7 = scmp.ne.s32.totalorder %s3404_s28, 0 }
0x1175   : > { %p2493_p8 = scmp.ne.s32.totalorder %s1705_s6, %s2492_s4  ;;  %s2639_s15 = smov [#allocation12]  }
0x1176   : > { %s2496_s30 = sshll.u32 %s2639_s15, 4  ;;  %s2497_s30 = int_to_ptr.vmem [resolvable:$false] %s2496_s30 }
0x1177   : > { %p2494_p1 = pnand %p2493_p8, %p3438_p7  ;;  %s2498_s24 = scalar_lea.vmem %s2497_s30, 256 }
0x1178   : > { %s2011_s3 = sshll.u32 %s3436_s11, 7  ;;  %p2499_p10 = scmp.lt.s32.totalorder %s1705_s6, %s2497_s30 }
0x1179   : > { %s3269_s8 = scalar_lea.hbm %s3437_s1, %s2011_s3  ;;  %p2495_p4 = pneg %p2494_p1 }
0x117a   : > { %p2500_p5 = scmp.lt.s32.totalorder %s2498_s24, %s2492_s4 }
0x117c   : > { %p2501_p9 = por %p2500_p5, %p2499_p10 }
0x117e   : > { %p2502_p2 = pnand %p2501_p9, %p2495_p4 }
0x1180   : > { %2505 = shalt.err (!%p2502_p2)
}
0x1181   : > { %s2506_s16 = scalar_lea.hbm %s3269_s8, 128  ;;  %s2510_s5 = scalar_lea.hbm %s3437_s1, 256 }
0x1182   : > { %p2507_p13 = scmp.ne.s32.totalorder %s3269_s8, %s2506_s16  ;;  %p2511_p3 = scmp.lt.u32.totalorder %s3269_s8, %s3437_s1 }
0x1183   : > { %p2512_p12 = scmp.lt.u32.totalorder %s2510_s5, %s2506_s16  ;;  %p2514_p8 = scmp.lt.u32.totalorder %s2506_s16, %s3269_s8 }
0x1184   : > { %p2508_p0 = pnand %p2507_p13, %p3438_p7 }
0x1185   : > { %p2513_p11 = por %p2512_p12, %p2511_p3 }
0x1186   : > { %p2509_p6 = pneg %p2508_p0 }
0x1187   : > { %p2515_p1 = por %p2514_p8, %p2513_p11 }
0x1189   : > { %p2516_p4 = pnand %p2515_p1, %p2509_p6 }
0x118b   : > { %2519 = shalt.err (!%p2516_p4)
}
0x118c   : > { %2180 = dma.vmem_to_hbm [thread:$0]  (%p3438_p7), %s1705_s6, 128, %s3269_s8, %s1691_s17  }
0x118d PF: > { %s3439_s9 = sld [smem:[#allocation19_spill]]  ;;  %s3440_s12 = sld [smem:[#allocation30_spill]] }
0x118e   : > { %p2203_p10 = scmp.ge.s32.totalorder %s2622_s27, 2 }
0x1193   : > { %s1716_s29 = sand.u32 1, %s3439_s9   ;;  %p3441_p5 = scmp.ne.s32.totalorder %s3440_s12, 0 }
0x1194   : > { %s1717_s22 = scalar_lea.sflag [#allocation5], %s1716_s29 }
0x1195   : > { %p2199_p9 = pnand %p2203_p10, %p3441_p5 }
0x1197   : > { %2577 = dma.done.wait (!%p2199_p9), %s1717_s22, 128  }
0x1198   : > { %2579 = vsyncadd (!%p2199_p9), %s1717_s22, 4294967168  ;;  %s33_s27 = sadd.s32 1, %s2622_s27   ;;  %s3442_s17 = sld [smem:[#allocation17_spill]] }
0x1199   : > { %p30_p2 = scmp.ge.s32.totalorder %s33_s27, 6   ;;  %s3443_s18 = sld [smem:[#allocation18_spill]] }
0x119a   : > { %s3444_s19 = sld [smem:[#allocation26_spill]]  ;;  %s3445_s28 = sld [smem:[#allocation20_spill]] }
0x119b   : > { %s3446_s22 = sld [smem:[#allocation29_spill]]  ;;  %s3447_s23 = sld [smem:[#allocation23_spill]] }
0x119c   : > { %s3448_s24 = sld [smem:[#allocation24_spill]]  ;;  %s3449_s25 = sld [smem:[#allocation25_spill]] }
0x119d   : > { %s3450_s26 = sld [smem:[#allocation27_spill]]  ;;  %s3451_s20 = smov %s2598_s21 }
0x119e   :  { %32 = sbr.rel (!%p30_p2) target bundleno = 26 (0x1a), region = 187 }
0x11a0   : > { %s3452_s21 = smov %s3445_s28 }
0x11a5   :  { %1722 = vsyncpa [#allocation4], 1 }
0x11a6   :  { %1724 = vsyncpa [#allocation4 + $0x1], 1 }
0x11a7   :  { %1725 = vsyncpa [#allocation7], 1 }
0x11a8   :  { %1727 = vsyncpa [#allocation7 + $0x1], 1 }
0x11a9   :  { %1728 = vsyncpa [#allocation10], 1 }
0x11aa   :  { %1730 = vsyncpa [#allocation10 + $0x1], 1 }
0x11ab   :  { %1731 = vsyncpa [#allocation5], 1 }
0x11ac   :  { %1733 = vsyncpa [#allocation5 + $0x1], 1 }

</bundles_post_ra>
